<compile_context>
chip_gen: v6e
topology: v6e:2x2x1
jax: 0.10.0
libtpu: 0.0.40
codegen_flags: <defaults>
</compile_context>

<pallas_src>
import jax
import jax.numpy as jnp
from jax.experimental import pallas as pl
from jax.experimental.pallas import tpu as pltpu

N_HIDDEN_LAYERS = 8   # hidden_1 .. hidden_8
LANE = 128            # lane width: hidden / output dims zero-padded to this
BATCH_ALIGN = 16      # batch padded to this so each of the 2 chains is 8-aligned


def mlp_kernel(x_ref, w_in_ref, b_in_ref, w_h_ref, b_h_ref,
               w_out_ref, b_out_ref, o_ref):
    b_pad = x_ref.shape[0]
    half = b_pad // 2
    hp = w_in_ref.shape[1]

    w_in = w_in_ref[...]   # (1, 128)
    b_in = b_in_ref[...]   # (1, 128)

    # Input layer: K == n_feature == 1 -> skip the MXU, do the outer product on
    # the VPU. Broadcast x once per chain into a lane-dense (half, 128) value.
    x_a = jnp.broadcast_to(x_ref[0:half, :], (half, hp))
    x_b = jnp.broadcast_to(x_ref[half:b_pad, :], (half, hp))
    h_a = jnp.maximum(x_a * w_in + b_in, 0.0)
    h_b = jnp.maximum(x_b * w_in + b_in, 0.0)

    # 8 hidden layers: two interleaved chains of lane-dense (half,128)@(128,128)
    # MXU matmuls + ReLU. Chain B's push overlaps chain A's result drain.
    for i in range(N_HIDDEN_LAYERS):
        w = w_h_ref[i]     # (128, 128)
        b = b_h_ref[i]     # (1, 128)
        h_a = jnp.maximum(
            jnp.dot(h_a, w, preferred_element_type=jnp.float32) + b, 0.0)
        h_b = jnp.maximum(
            jnp.dot(h_b, w, preferred_element_type=jnp.float32) + b, 0.0)

    # Output layer folded into a lane-dense 128-wide matmul; only the first
    # n_output columns carry real weights/bias (rest zeros), wrapper slices
    # them off. Store each half at a sublane-aligned offset (8 | half).
    w_out = w_out_ref[...]
    b_out = b_out_ref[...]
    o_ref[0:half, :] = (
        jnp.dot(h_a, w_out, preferred_element_type=jnp.float32) + b_out)
    o_ref[half:b_pad, :] = (
        jnp.dot(h_b, w_out, preferred_element_type=jnp.float32) + b_out)


def init_params(key, n_feature, n_hidden, n_output):
    """Deterministic PyTorch-style init: U(-1/sqrt(fan_in), 1/sqrt(fan_in)).

    Weights are stored pre-transposed as (in_features, out_features)."""
    ks = jax.random.split(key, 6)

    def unif(k, shape, fan_in):
        bound = 1.0 / jnp.sqrt(float(fan_in))
        return jax.random.uniform(k, shape, jnp.float32, -bound, bound)

    return {
        "w_in": unif(ks[0], (n_feature, n_hidden), n_feature),
        "b_in": unif(ks[1], (1, n_hidden), n_feature),
        "w_h": unif(ks[2], (N_HIDDEN_LAYERS, n_hidden, n_hidden), n_hidden),
        "b_h": unif(ks[3], (N_HIDDEN_LAYERS, 1, n_hidden), n_hidden),
        "w_out": unif(ks[4], (n_hidden, n_output), n_hidden),
        "b_out": unif(ks[5], (1, n_output), n_hidden),
    }


def pad_params(params):
    """Zero-pad hidden/output dims to LANE (128) for lane-dense kernel tiles."""
    n_feature = params["w_in"].shape[0]
    hp = LANE

    def pad_last2(a, shape):
        out = jnp.zeros(shape, jnp.float32)
        return out.at[..., :a.shape[-2], :a.shape[-1]].set(a)

    return {
        "w_in": pad_last2(params["w_in"], (n_feature, hp)),
        "b_in": pad_last2(params["b_in"], (1, hp)),
        "w_h": pad_last2(params["w_h"], (N_HIDDEN_LAYERS, hp, hp)),
        "b_h": pad_last2(params["b_h"], (N_HIDDEN_LAYERS, 1, hp)),
        "w_out": pad_last2(params["w_out"], (hp, hp)),
        "b_out": pad_last2(params["b_out"], (1, hp)),
    }


def net_forward(x, padded_params, n_output):
    """x: (B, 1) f32. padded_params: output of pad_params. Returns (B, n_output)."""
    B, n_feature = x.shape
    assert n_feature == 1, "kernel specializes the input layer to n_feature == 1"
    hp = LANE

    # Pad batch to a multiple of 16 so each of the 2 interleaved sub-chains is
    # sublane-aligned (8 rows for f32). Far less waste than padding to 128.
    b_pad = ((B + BATCH_ALIGN - 1) // BATCH_ALIGN) * BATCH_ALIGN
    x_pad = jnp.zeros((b_pad, n_feature), jnp.float32).at[:B].set(x)

    vmem = pl.BlockSpec(memory_space=pltpu.MemorySpace.VMEM)

    flops = 2 * b_pad * hp * hp * (N_HIDDEN_LAYERS + 1) + 3 * b_pad * hp
    bytes_accessed = 4 * (x_pad.size
                          + sum(int(v.size) for v in padded_params.values())
                          + b_pad * hp)

    out_pad = pl.pallas_call(
        mlp_kernel,
        out_shape=jax.ShapeDtypeStruct((b_pad, hp), jnp.float32),
        in_specs=[vmem] * 7,
        out_specs=vmem,
        cost_estimate=pl.CostEstimate(flops=flops, transcendentals=0,
                                      bytes_accessed=bytes_accessed),
    )(x_pad, padded_params["w_in"], padded_params["b_in"],
      padded_params["w_h"], padded_params["b_h"],
      padded_params["w_out"], padded_params["b_out"])

    # Slice off batch padding and the zero-weight output columns.
    return out_pad[:B, :n_output]


def reference_forward(x, params):
    h = jnp.maximum(x @ params["w_in"] + params["b_in"], 0.0)
    for i in range(N_HIDDEN_LAYERS):
        h = jnp.maximum(h @ params["w_h"][i] + params["b_h"][i], 0.0)
    return h @ params["w_out"] + params["b_out"]


if __name__ == "__main__":
    n_feature, n_hidden, n_output = 1, 32, 1
    batch = 100  # mirrors torch.linspace(-1, 1, 100).unsqueeze(1)

    key = jax.random.PRNGKey(0)
    params = init_params(key, n_feature, n_hidden, n_output)
    padded = pad_params(params)

    # x = unsqueeze(linspace(-1, 1, 100), dim=1) -> (100, 1)
    x = jnp.linspace(-1.0, 1.0, batch, dtype=jnp.float32)[:, None]

    out = net_forward(x, padded, n_output)
    out = jax.block_until_ready(out)

    ref = reference_forward(x, params)
    assert out.shape == (batch, n_output)
    assert jnp.allclose(out, ref, atol=1e-5, rtol=1e-5)

    print("KERNEL_OK")
</pallas_src>

<mosaic_0001>
module attributes {stable_mosaic.version = 11 : i64} {
  func.func @mlp_kernel(%arg0: memref<112x1xf32, #tpu.memory_space<vmem>>, %arg1: memref<1x128xf32, #tpu.memory_space<vmem>>, %arg2: memref<1x128xf32, #tpu.memory_space<vmem>>, %arg3: memref<8x128x128xf32, #tpu.memory_space<vmem>>, %arg4: memref<8x1x128xf32, #tpu.memory_space<vmem>>, %arg5: memref<128x128xf32, #tpu.memory_space<vmem>>, %arg6: memref<1x128xf32, #tpu.memory_space<vmem>>, %arg7: memref<112x128xf32, #tpu.memory_space<vmem>>) attributes {dimension_semantics = [], scalar_prefetch = 0 : i64, scratch_operands = 0 : i64, tpu.core_type = #tpu.core_type<tc>} {
    %c0 = arith.constant 0 : index
    %c0_0 = arith.constant 0 : index
    %0 = vector.load %arg1[%c0, %c0_0] : memref<1x128xf32, #tpu.memory_space<vmem>>, vector<1x128xf32>
    %c0_1 = arith.constant 0 : index
    %c0_2 = arith.constant 0 : index
    %1 = vector.load %arg2[%c0_1, %c0_2] : memref<1x128xf32, #tpu.memory_space<vmem>>, vector<1x128xf32>
    %c0_3 = arith.constant 0 : index
    %c0_4 = arith.constant 0 : index
    %2 = vector.load %arg0[%c0_3, %c0_4] : memref<112x1xf32, #tpu.memory_space<vmem>>, vector<56x1xf32>
    %3 = vector.shape_cast %2 : vector<56x1xf32> to vector<56x1xf32>
    %4 = vector.broadcast %3 : vector<56x1xf32> to vector<56x128xf32>
    %c56 = arith.constant 56 : index
    %c0_5 = arith.constant 0 : index
    %5 = vector.load %arg0[%c56, %c0_5] : memref<112x1xf32, #tpu.memory_space<vmem>>, vector<56x1xf32>
    %6 = vector.shape_cast %5 : vector<56x1xf32> to vector<56x1xf32>
    %7 = vector.broadcast %6 : vector<56x1xf32> to vector<56x128xf32>
    %8 = vector.broadcast %0 : vector<1x128xf32> to vector<56x128xf32>
    %9 = arith.mulf %4, %8 : vector<56x128xf32>
    %10 = vector.broadcast %1 : vector<1x128xf32> to vector<56x128xf32>
    %11 = arith.addf %9, %10 : vector<56x128xf32>
    %cst = arith.constant 0.000000e+00 : f32
    %12 = vector.broadcast %cst : f32 to vector<56x128xf32>
    %13 = arith.maximumf %11, %12 : vector<56x128xf32>
    %14 = vector.broadcast %0 : vector<1x128xf32> to vector<56x128xf32>
    %15 = arith.mulf %7, %14 : vector<56x128xf32>
    %16 = vector.broadcast %1 : vector<1x128xf32> to vector<56x128xf32>
    %17 = arith.addf %15, %16 : vector<56x128xf32>
    %cst_6 = arith.constant 0.000000e+00 : f32
    %18 = vector.broadcast %cst_6 : f32 to vector<56x128xf32>
    %19 = arith.maximumf %17, %18 : vector<56x128xf32>
    %c0_7 = arith.constant 0 : index
    %c0_8 = arith.constant 0 : index
    %c0_9 = arith.constant 0 : index
    %20 = vector.load %arg3[%c0_7, %c0_8, %c0_9] : memref<8x128x128xf32, #tpu.memory_space<vmem>>, vector<1x128x128xf32>
    %21 = vector.shape_cast %20 : vector<1x128x128xf32> to vector<128x128xf32>
    %c0_10 = arith.constant 0 : index
    %c0_11 = arith.constant 0 : index
    %c0_12 = arith.constant 0 : index
    %22 = vector.load %arg4[%c0_10, %c0_11, %c0_12] : memref<8x1x128xf32, #tpu.memory_space<vmem>>, vector<1x1x128xf32>
    %23 = vector.shape_cast %22 : vector<1x1x128xf32> to vector<1x128xf32>
    %cst_13 = arith.constant dense<0.000000e+00> : vector<56x128xf32>
    %24 = tpu.matmul %13, %21, %cst_13 {dimension_numbers = #tpu.dot_dimension_numbers<[1], [0], [0], [1], [0, 0, 1, 1], [], []>} : vector<56x128xf32>, vector<128x128xf32>, vector<56x128xf32> -> vector<56x128xf32>
    %25 = vector.broadcast %23 : vector<1x128xf32> to vector<56x128xf32>
    %26 = arith.addf %24, %25 : vector<56x128xf32>
    %cst_14 = arith.constant 0.000000e+00 : f32
    %27 = vector.broadcast %cst_14 : f32 to vector<56x128xf32>
    %28 = arith.maximumf %26, %27 : vector<56x128xf32>
    %cst_15 = arith.constant dense<0.000000e+00> : vector<56x128xf32>
    %29 = tpu.matmul %19, %21, %cst_15 {dimension_numbers = #tpu.dot_dimension_numbers<[1], [0], [0], [1], [0, 0, 1, 1], [], []>} : vector<56x128xf32>, vector<128x128xf32>, vector<56x128xf32> -> vector<56x128xf32>
    %30 = vector.broadcast %23 : vector<1x128xf32> to vector<56x128xf32>
    %31 = arith.addf %29, %30 : vector<56x128xf32>
    %cst_16 = arith.constant 0.000000e+00 : f32
    %32 = vector.broadcast %cst_16 : f32 to vector<56x128xf32>
    %33 = arith.maximumf %31, %32 : vector<56x128xf32>
    %c1 = arith.constant 1 : index
    %c0_17 = arith.constant 0 : index
    %c0_18 = arith.constant 0 : index
    %34 = vector.load %arg3[%c1, %c0_17, %c0_18] : memref<8x128x128xf32, #tpu.memory_space<vmem>>, vector<1x128x128xf32>
    %35 = vector.shape_cast %34 : vector<1x128x128xf32> to vector<128x128xf32>
    %c1_19 = arith.constant 1 : index
    %c0_20 = arith.constant 0 : index
    %c0_21 = arith.constant 0 : index
    %36 = vector.load %arg4[%c1_19, %c0_20, %c0_21] : memref<8x1x128xf32, #tpu.memory_space<vmem>>, vector<1x1x128xf32>
    %37 = vector.shape_cast %36 : vector<1x1x128xf32> to vector<1x128xf32>
    %cst_22 = arith.constant dense<0.000000e+00> : vector<56x128xf32>
    %38 = tpu.matmul %28, %35, %cst_22 {dimension_numbers = #tpu.dot_dimension_numbers<[1], [0], [0], [1], [0, 0, 1, 1], [], []>} : vector<56x128xf32>, vector<128x128xf32>, vector<56x128xf32> -> vector<56x128xf32>
    %39 = vector.broadcast %37 : vector<1x128xf32> to vector<56x128xf32>
    %40 = arith.addf %38, %39 : vector<56x128xf32>
    %cst_23 = arith.constant 0.000000e+00 : f32
    %41 = vector.broadcast %cst_23 : f32 to vector<56x128xf32>
    %42 = arith.maximumf %40, %41 : vector<56x128xf32>
    %cst_24 = arith.constant dense<0.000000e+00> : vector<56x128xf32>
    %43 = tpu.matmul %33, %35, %cst_24 {dimension_numbers = #tpu.dot_dimension_numbers<[1], [0], [0], [1], [0, 0, 1, 1], [], []>} : vector<56x128xf32>, vector<128x128xf32>, vector<56x128xf32> -> vector<56x128xf32>
    %44 = vector.broadcast %37 : vector<1x128xf32> to vector<56x128xf32>
    %45 = arith.addf %43, %44 : vector<56x128xf32>
    %cst_25 = arith.constant 0.000000e+00 : f32
    %46 = vector.broadcast %cst_25 : f32 to vector<56x128xf32>
    %47 = arith.maximumf %45, %46 : vector<56x128xf32>
    %c2 = arith.constant 2 : index
    %c0_26 = arith.constant 0 : index
    %c0_27 = arith.constant 0 : index
    %48 = vector.load %arg3[%c2, %c0_26, %c0_27] : memref<8x128x128xf32, #tpu.memory_space<vmem>>, vector<1x128x128xf32>
    %49 = vector.shape_cast %48 : vector<1x128x128xf32> to vector<128x128xf32>
    %c2_28 = arith.constant 2 : index
    %c0_29 = arith.constant 0 : index
    %c0_30 = arith.constant 0 : index
    %50 = vector.load %arg4[%c2_28, %c0_29, %c0_30] : memref<8x1x128xf32, #tpu.memory_space<vmem>>, vector<1x1x128xf32>
    %51 = vector.shape_cast %50 : vector<1x1x128xf32> to vector<1x128xf32>
    %cst_31 = arith.constant dense<0.000000e+00> : vector<56x128xf32>
    %52 = tpu.matmul %42, %49, %cst_31 {dimension_numbers = #tpu.dot_dimension_numbers<[1], [0], [0], [1], [0, 0, 1, 1], [], []>} : vector<56x128xf32>, vector<128x128xf32>, vector<56x128xf32> -> vector<56x128xf32>
    %53 = vector.broadcast %51 : vector<1x128xf32> to vector<56x128xf32>
    %54 = arith.addf %52, %53 : vector<56x128xf32>
    %cst_32 = arith.constant 0.000000e+00 : f32
    %55 = vector.broadcast %cst_32 : f32 to vector<56x128xf32>
    %56 = arith.maximumf %54, %55 : vector<56x128xf32>
    %cst_33 = arith.constant dense<0.000000e+00> : vector<56x128xf32>
    %57 = tpu.matmul %47, %49, %cst_33 {dimension_numbers = #tpu.dot_dimension_numbers<[1], [0], [0], [1], [0, 0, 1, 1], [], []>} : vector<56x128xf32>, vector<128x128xf32>, vector<56x128xf32> -> vector<56x128xf32>
    %58 = vector.broadcast %51 : vector<1x128xf32> to vector<56x128xf32>
    %59 = arith.addf %57, %58 : vector<56x128xf32>
    %cst_34 = arith.constant 0.000000e+00 : f32
    %60 = vector.broadcast %cst_34 : f32 to vector<56x128xf32>
    %61 = arith.maximumf %59, %60 : vector<56x128xf32>
    %c3 = arith.constant 3 : index
    %c0_35 = arith.constant 0 : index
    %c0_36 = arith.constant 0 : index
    %62 = vector.load %arg3[%c3, %c0_35, %c0_36] : memref<8x128x128xf32, #tpu.memory_space<vmem>>, vector<1x128x128xf32>
    %63 = vector.shape_cast %62 : vector<1x128x128xf32> to vector<128x128xf32>
    %c3_37 = arith.constant 3 : index
    %c0_38 = arith.constant 0 : index
    %c0_39 = arith.constant 0 : index
    %64 = vector.load %arg4[%c3_37, %c0_38, %c0_39] : memref<8x1x128xf32, #tpu.memory_space<vmem>>, vector<1x1x128xf32>
    %65 = vector.shape_cast %64 : vector<1x1x128xf32> to vector<1x128xf32>
    %cst_40 = arith.constant dense<0.000000e+00> : vector<56x128xf32>
    %66 = tpu.matmul %56, %63, %cst_40 {dimension_numbers = #tpu.dot_dimension_numbers<[1], [0], [0], [1], [0, 0, 1, 1], [], []>} : vector<56x128xf32>, vector<128x128xf32>, vector<56x128xf32> -> vector<56x128xf32>
    %67 = vector.broadcast %65 : vector<1x128xf32> to vector<56x128xf32>
    %68 = arith.addf %66, %67 : vector<56x128xf32>
    %cst_41 = arith.constant 0.000000e+00 : f32
    %69 = vector.broadcast %cst_41 : f32 to vector<56x128xf32>
    %70 = arith.maximumf %68, %69 : vector<56x128xf32>
    %cst_42 = arith.constant dense<0.000000e+00> : vector<56x128xf32>
    %71 = tpu.matmul %61, %63, %cst_42 {dimension_numbers = #tpu.dot_dimension_numbers<[1], [0], [0], [1], [0, 0, 1, 1], [], []>} : vector<56x128xf32>, vector<128x128xf32>, vector<56x128xf32> -> vector<56x128xf32>
    %72 = vector.broadcast %65 : vector<1x128xf32> to vector<56x128xf32>
    %73 = arith.addf %71, %72 : vector<56x128xf32>
    %cst_43 = arith.constant 0.000000e+00 : f32
    %74 = vector.broadcast %cst_43 : f32 to vector<56x128xf32>
    %75 = arith.maximumf %73, %74 : vector<56x128xf32>
    %c4 = arith.constant 4 : index
    %c0_44 = arith.constant 0 : index
    %c0_45 = arith.constant 0 : index
    %76 = vector.load %arg3[%c4, %c0_44, %c0_45] : memref<8x128x128xf32, #tpu.memory_space<vmem>>, vector<1x128x128xf32>
    %77 = vector.shape_cast %76 : vector<1x128x128xf32> to vector<128x128xf32>
    %c4_46 = arith.constant 4 : index
    %c0_47 = arith.constant 0 : index
    %c0_48 = arith.constant 0 : index
    %78 = vector.load %arg4[%c4_46, %c0_47, %c0_48] : memref<8x1x128xf32, #tpu.memory_space<vmem>>, vector<1x1x128xf32>
    %79 = vector.shape_cast %78 : vector<1x1x128xf32> to vector<1x128xf32>
    %cst_49 = arith.constant dense<0.000000e+00> : vector<56x128xf32>
    %80 = tpu.matmul %70, %77, %cst_49 {dimension_numbers = #tpu.dot_dimension_numbers<[1], [0], [0], [1], [0, 0, 1, 1], [], []>} : vector<56x128xf32>, vector<128x128xf32>, vector<56x128xf32> -> vector<56x128xf32>
    %81 = vector.broadcast %79 : vector<1x128xf32> to vector<56x128xf32>
    %82 = arith.addf %80, %81 : vector<56x128xf32>
    %cst_50 = arith.constant 0.000000e+00 : f32
    %83 = vector.broadcast %cst_50 : f32 to vector<56x128xf32>
    %84 = arith.maximumf %82, %83 : vector<56x128xf32>
    %cst_51 = arith.constant dense<0.000000e+00> : vector<56x128xf32>
    %85 = tpu.matmul %75, %77, %cst_51 {dimension_numbers = #tpu.dot_dimension_numbers<[1], [0], [0], [1], [0, 0, 1, 1], [], []>} : vector<56x128xf32>, vector<128x128xf32>, vector<56x128xf32> -> vector<56x128xf32>
    %86 = vector.broadcast %79 : vector<1x128xf32> to vector<56x128xf32>
    %87 = arith.addf %85, %86 : vector<56x128xf32>
    %cst_52 = arith.constant 0.000000e+00 : f32
    %88 = vector.broadcast %cst_52 : f32 to vector<56x128xf32>
    %89 = arith.maximumf %87, %88 : vector<56x128xf32>
    %c5 = arith.constant 5 : index
    %c0_53 = arith.constant 0 : index
    %c0_54 = arith.constant 0 : index
    %90 = vector.load %arg3[%c5, %c0_53, %c0_54] : memref<8x128x128xf32, #tpu.memory_space<vmem>>, vector<1x128x128xf32>
    %91 = vector.shape_cast %90 : vector<1x128x128xf32> to vector<128x128xf32>
    %c5_55 = arith.constant 5 : index
    %c0_56 = arith.constant 0 : index
    %c0_57 = arith.constant 0 : index
    %92 = vector.load %arg4[%c5_55, %c0_56, %c0_57] : memref<8x1x128xf32, #tpu.memory_space<vmem>>, vector<1x1x128xf32>
    %93 = vector.shape_cast %92 : vector<1x1x128xf32> to vector<1x128xf32>
    %cst_58 = arith.constant dense<0.000000e+00> : vector<56x128xf32>
    %94 = tpu.matmul %84, %91, %cst_58 {dimension_numbers = #tpu.dot_dimension_numbers<[1], [0], [0], [1], [0, 0, 1, 1], [], []>} : vector<56x128xf32>, vector<128x128xf32>, vector<56x128xf32> -> vector<56x128xf32>
    %95 = vector.broadcast %93 : vector<1x128xf32> to vector<56x128xf32>
    %96 = arith.addf %94, %95 : vector<56x128xf32>
    %cst_59 = arith.constant 0.000000e+00 : f32
    %97 = vector.broadcast %cst_59 : f32 to vector<56x128xf32>
    %98 = arith.maximumf %96, %97 : vector<56x128xf32>
    %cst_60 = arith.constant dense<0.000000e+00> : vector<56x128xf32>
    %99 = tpu.matmul %89, %91, %cst_60 {dimension_numbers = #tpu.dot_dimension_numbers<[1], [0], [0], [1], [0, 0, 1, 1], [], []>} : vector<56x128xf32>, vector<128x128xf32>, vector<56x128xf32> -> vector<56x128xf32>
    %100 = vector.broadcast %93 : vector<1x128xf32> to vector<56x128xf32>
    %101 = arith.addf %99, %100 : vector<56x128xf32>
    %cst_61 = arith.constant 0.000000e+00 : f32
    %102 = vector.broadcast %cst_61 : f32 to vector<56x128xf32>
    %103 = arith.maximumf %101, %102 : vector<56x128xf32>
    %c6 = arith.constant 6 : index
    %c0_62 = arith.constant 0 : index
    %c0_63 = arith.constant 0 : index
    %104 = vector.load %arg3[%c6, %c0_62, %c0_63] : memref<8x128x128xf32, #tpu.memory_space<vmem>>, vector<1x128x128xf32>
    %105 = vector.shape_cast %104 : vector<1x128x128xf32> to vector<128x128xf32>
    %c6_64 = arith.constant 6 : index
    %c0_65 = arith.constant 0 : index
    %c0_66 = arith.constant 0 : index
    %106 = vector.load %arg4[%c6_64, %c0_65, %c0_66] : memref<8x1x128xf32, #tpu.memory_space<vmem>>, vector<1x1x128xf32>
    %107 = vector.shape_cast %106 : vector<1x1x128xf32> to vector<1x128xf32>
    %cst_67 = arith.constant dense<0.000000e+00> : vector<56x128xf32>
    %108 = tpu.matmul %98, %105, %cst_67 {dimension_numbers = #tpu.dot_dimension_numbers<[1], [0], [0], [1], [0, 0, 1, 1], [], []>} : vector<56x128xf32>, vector<128x128xf32>, vector<56x128xf32> -> vector<56x128xf32>
    %109 = vector.broadcast %107 : vector<1x128xf32> to vector<56x128xf32>
    %110 = arith.addf %108, %109 : vector<56x128xf32>
    %cst_68 = arith.constant 0.000000e+00 : f32
    %111 = vector.broadcast %cst_68 : f32 to vector<56x128xf32>
    %112 = arith.maximumf %110, %111 : vector<56x128xf32>
    %cst_69 = arith.constant dense<0.000000e+00> : vector<56x128xf32>
    %113 = tpu.matmul %103, %105, %cst_69 {dimension_numbers = #tpu.dot_dimension_numbers<[1], [0], [0], [1], [0, 0, 1, 1], [], []>} : vector<56x128xf32>, vector<128x128xf32>, vector<56x128xf32> -> vector<56x128xf32>
    %114 = vector.broadcast %107 : vector<1x128xf32> to vector<56x128xf32>
    %115 = arith.addf %113, %114 : vector<56x128xf32>
    %cst_70 = arith.constant 0.000000e+00 : f32
    %116 = vector.broadcast %cst_70 : f32 to vector<56x128xf32>
    %117 = arith.maximumf %115, %116 : vector<56x128xf32>
    %c7 = arith.constant 7 : index
    %c0_71 = arith.constant 0 : index
    %c0_72 = arith.constant 0 : index
    %118 = vector.load %arg3[%c7, %c0_71, %c0_72] : memref<8x128x128xf32, #tpu.memory_space<vmem>>, vector<1x128x128xf32>
    %119 = vector.shape_cast %118 : vector<1x128x128xf32> to vector<128x128xf32>
    %c7_73 = arith.constant 7 : index
    %c0_74 = arith.constant 0 : index
    %c0_75 = arith.constant 0 : index
    %120 = vector.load %arg4[%c7_73, %c0_74, %c0_75] : memref<8x1x128xf32, #tpu.memory_space<vmem>>, vector<1x1x128xf32>
    %121 = vector.shape_cast %120 : vector<1x1x128xf32> to vector<1x128xf32>
    %cst_76 = arith.constant dense<0.000000e+00> : vector<56x128xf32>
    %122 = tpu.matmul %112, %119, %cst_76 {dimension_numbers = #tpu.dot_dimension_numbers<[1], [0], [0], [1], [0, 0, 1, 1], [], []>} : vector<56x128xf32>, vector<128x128xf32>, vector<56x128xf32> -> vector<56x128xf32>
    %123 = vector.broadcast %121 : vector<1x128xf32> to vector<56x128xf32>
    %124 = arith.addf %122, %123 : vector<56x128xf32>
    %cst_77 = arith.constant 0.000000e+00 : f32
    %125 = vector.broadcast %cst_77 : f32 to vector<56x128xf32>
    %126 = arith.maximumf %124, %125 : vector<56x128xf32>
    %cst_78 = arith.constant dense<0.000000e+00> : vector<56x128xf32>
    %127 = tpu.matmul %117, %119, %cst_78 {dimension_numbers = #tpu.dot_dimension_numbers<[1], [0], [0], [1], [0, 0, 1, 1], [], []>} : vector<56x128xf32>, vector<128x128xf32>, vector<56x128xf32> -> vector<56x128xf32>
    %128 = vector.broadcast %121 : vector<1x128xf32> to vector<56x128xf32>
    %129 = arith.addf %127, %128 : vector<56x128xf32>
    %cst_79 = arith.constant 0.000000e+00 : f32
    %130 = vector.broadcast %cst_79 : f32 to vector<56x128xf32>
    %131 = arith.maximumf %129, %130 : vector<56x128xf32>
    %c0_80 = arith.constant 0 : index
    %c0_81 = arith.constant 0 : index
    %132 = vector.load %arg5[%c0_80, %c0_81] : memref<128x128xf32, #tpu.memory_space<vmem>>, vector<128x128xf32>
    %c0_82 = arith.constant 0 : index
    %c0_83 = arith.constant 0 : index
    %133 = vector.load %arg6[%c0_82, %c0_83] : memref<1x128xf32, #tpu.memory_space<vmem>>, vector<1x128xf32>
    %cst_84 = arith.constant dense<0.000000e+00> : vector<56x128xf32>
    %134 = tpu.matmul %126, %132, %cst_84 {dimension_numbers = #tpu.dot_dimension_numbers<[1], [0], [0], [1], [0, 0, 1, 1], [], []>} : vector<56x128xf32>, vector<128x128xf32>, vector<56x128xf32> -> vector<56x128xf32>
    %135 = vector.broadcast %133 : vector<1x128xf32> to vector<56x128xf32>
    %136 = arith.addf %134, %135 : vector<56x128xf32>
    %c0_85 = arith.constant 0 : index
    %c0_86 = arith.constant 0 : index
    %137 = vector.load %arg7[%c0_85, %c0_86] : memref<112x128xf32, #tpu.memory_space<vmem>>, vector<56x128xf32>
    tpu.vector_store %arg7[%c0_85, %c0_86], %136 {strides = array<i32>} : memref<112x128xf32, #tpu.memory_space<vmem>>, vector<56x128xf32>,
    %cst_87 = arith.constant dense<0.000000e+00> : vector<56x128xf32>
    %138 = tpu.matmul %131, %132, %cst_87 {dimension_numbers = #tpu.dot_dimension_numbers<[1], [0], [0], [1], [0, 0, 1, 1], [], []>} : vector<56x128xf32>, vector<128x128xf32>, vector<56x128xf32> -> vector<56x128xf32>
    %139 = vector.broadcast %133 : vector<1x128xf32> to vector<56x128xf32>
    %140 = arith.addf %138, %139 : vector<56x128xf32>
    %c56_88 = arith.constant 56 : index
    %c0_89 = arith.constant 0 : index
    %141 = vector.load %arg7[%c56_88, %c0_89] : memref<112x128xf32, #tpu.memory_space<vmem>>, vector<56x128xf32>
    tpu.vector_store %arg7[%c56_88, %c0_89], %140 {strides = array<i32>} : memref<112x128xf32, #tpu.memory_space<vmem>>, vector<56x128xf32>,
    return
  }
}

</mosaic_0001>

<bundles_post_ra>
// kernel: tpu_custom_call.1
= control target key start
LH: loop header
LB: loop body
LE: loop exit
PB: predicated region body
PF: predicated region fallthrough
CT: control target
= control target key end

     0   :  { %12 = vsyncpa [#allocation3], 0  ;;  %s4663_s0 = inlined_call_operand.vmem [shape: f32[112,1], index: 0, kind: input, shape index: {}]   ;;  %s4664_s1 = inlined_call_operand.vmem [shape: f32[1,128], index: 1, kind: input, shape index: {}]   ;;  %s4665_s2 = inlined_call_operand.vmem [shape: f32[1,128], index: 2, kind: input, shape index: {}]   ;;  %s4666_s3 = inlined_call_operand.hbm [shape: f32[8,128,128], index: 3, kind: input, shape index: {}]   ;;  %s4667_s4 = inlined_call_operand.vmem [shape: f32[8,1,128], index: 4, kind: input, shape index: {}]   ;;  %s4668_s5 = inlined_call_operand.hbm [shape: f32[128,128], index: 5, kind: input, shape index: {}]   ;;  %s4669_s6 = inlined_call_operand.vmem [shape: f32[1,128], index: 6, kind: input, shape index: {}]   ;;  %s4670_s7 = inlined_call_operand.hbm [shape: f32[112,128], index: 7, kind: output, shape index: {}]  }
   0x1   :  { %13 = vsyncpa [#allocation6], 0 }
   0x2   :  { %14 = vsyncpa [#allocation4], 0  ;;  %s3822_s24 = smov [#allocation2]  }
   0x3   :  { %s26_s25 = sshll.u32 %s3822_s24, 4  ;;  %s27_s25 = int_to_ptr.vmem [resolvable:$true] %s26_s25 }
   0x4   :  { %s3764_s26 = scalar_lea.vmem %s27_s25, 16384  ;;  %p3769_p1 = scmp.lt.s32.totalorder %s27_s25, %s27_s25 }
   0x5   :  { %p3765_p0 = scmp.ne.s32.totalorder %s27_s25, %s3764_s26  ;;  %p3770_p2 = scmp.lt.s32.totalorder %s3764_s26, %s3764_s26 }
   0x7   :  { %p3771_p3 = por %p3770_p2, %p3769_p1 }
   0x9   :  { %p3772_p4 = pnand %p3771_p3, %p3765_p0 }
   0xb   :  { %3775 = shalt.err (!%p3772_p4)
}
   0xc   :  { %s3823_s27 = smov 128   ;;  %s3824_s28 = smov 8  }
   0xd   :  { %32 = dma.hbm_to_vmem [thread:$0]  %s4666_s3, 16384, %s27_s25, [#allocation3], %s3823_s27, %s3823_s27, %s3824_s28  }
   0xe   :  { %s3825_s8 = smov [#allocation5]  }
   0xf   :  { %s40_s9 = sshll.u32 %s3825_s8, 4  ;;  %s41_s9 = int_to_ptr.vmem [resolvable:$true] %s40_s9 }
  0x10   :  { %s3784_s10 = scalar_lea.vmem %s41_s9, 2048  ;;  %p3789_p6 = scmp.lt.s32.totalorder %s41_s9, %s41_s9 }
  0x11   :  { %p3785_p5 = scmp.ne.s32.totalorder %s41_s9, %s3784_s10  ;;  %p3790_p7 = scmp.lt.s32.totalorder %s3784_s10, %s3784_s10 }
  0x13   :  { %p3791_p8 = por %p3790_p7, %p3789_p6 }
  0x15   :  { %p3792_p9 = pnand %p3791_p8, %p3785_p5 }
  0x17   :  { %3795 = shalt.err (!%p3792_p9)
}
  0x18   :  { %46 = dma.hbm_to_vmem [thread:$0]  %s4668_s5, 2048, %s41_s9, [#allocation6], %s3823_s27, %s3823_s27, %s3824_s28  }
  0x19   :  { %3816 = dma.done.wait [#allocation3], 16384  }
  0x1a   :  { %3817 = vsyncadd [#allocation3], 4294950912 }
  0x1b   :  { %3818 = dma.done.wait [#allocation6], 2048  }
  0x1c   :  { %3819 = vsyncadd [#allocation6], 4294965248  ;;  %v3826_v0 = vmov 0   ;;  %v3827_v1 = vmov 0.0   ;;  %v58_v2 = vld [vmem:[%s4663_s0 + $0x8] sm:$0xff]  ;;  %v57_v3 = vld [vmem:[%s4663_s0] sm:$0xff] }
  0x1d   :  { %3755 = vset.pattern.permute.xlu1 %v3826_v0  ;;  %3754 = vset.pattern.permute.xlu0 %v3826_v0  ;;  %v100_v4 = vld [vmem:[%s4663_s0 + $0x40] sm:$0xff]  ;;  %v99_v5 = vld [vmem:[%s4663_s0 + $0x38] sm:$0xff]  ;;  %vm3828_vm0 = vmmov 0   ;;  %v209_v7 = vld [vmem:[#allocation2 + $0x70] sm:$0xff] }
  0x1e   :  { %2792 = vmatprep.subr.mxu0 %v3827_v1  ;;  %2845 = vmatprep.subr.mxu1 %v3827_v1  ;;  %v210_v6 = vld [vmem:[#allocation2 + $0x78] sm:$0xff]  ;;  %v101_v8 = vld [vmem:[%s4663_s0 + $0x48] sm:$0xff]  ;;  %v59_v9 = vld [vmem:[%s4663_s0 + $0x10] sm:$0xff] }
  0x1f   :  { %71 = vperm.xlu1 %3755, %v58_v2   ;;  %66 = vperm.xlu0 %3754, %v57_v3   ;;  %v208_v10 = vld [vmem:[#allocation2 + $0x68] sm:$0xff]  ;;  %v102_v11 = vld [vmem:[%s4663_s0 + $0x50] sm:$0xff]  ;;  %v60_v12 = vld [vmem:[%s4663_s0 + $0x18] sm:$0xff] }
  0x20   :  { %2824 = vmatprep.mubr.msk.f32.mxu0 %vm3828_vm0, %v3827_v1  ;;  %2877 = vmatprep.mubr.msk.f32.mxu1 %vm3828_vm0, %v3827_v1  ;;  %v207_v13 = vld [vmem:[#allocation2 + $0x60] sm:$0xff]  ;;  %v206_v14 = vld [vmem:[#allocation2 + $0x58] sm:$0xff]  ;;  %v205_v17 = vld [vmem:[#allocation2 + $0x50] sm:$0xff] }
  0x21   :  { %2793 = vmatpush3.msra.mxu0 %v210_v6  ;;  %2846 = vmatpush3.msra.mxu1 %v210_v6  ;;  %v103_v15 = vld [vmem:[%s4663_s0 + $0x58] sm:$0xff]  ;;  %v61_v16 = vld [vmem:[%s4663_s0 + $0x20] sm:$0xff]  ;;  %v62_v19 = vld [vmem:[%s4663_s0 + $0x28] sm:$0xff] }
  0x22   :  { %2794 = vmatprep.subr.mxu0 %v3827_v1  ;;  %2847 = vmatprep.subr.mxu1 %v3827_v1  ;;  %v104_v18 = vld [vmem:[%s4663_s0 + $0x60] sm:$0xff]  ;;  %v204_v20 = vld [vmem:[#allocation2 + $0x48] sm:$0xff]  ;;  %v63_v23 = vld [vmem:[%s4663_s0 + $0x30] sm:$0xff] }
  0x23   :  { %113 = vperm.xlu1 %3755, %v100_v4   ;;  %108 = vperm.xlu0 %3754, %v99_v5   ;;  %v203_v21 = vld [vmem:[#allocation2 + $0x40] sm:$0xff]  ;;  %v105_v22 = vld [vmem:[%s4663_s0 + $0x68] sm:$0xff]  ;;  %v202_v24 = vld [vmem:[#allocation2 + $0x38] sm:$0xff] }
  0x24   :  { %2795 = vmatpush3.msra.mxu0 %v209_v7  ;;  %2848 = vmatpush3.msra.mxu1 %v209_v7  ;;  %v201_v25 = vld [vmem:[#allocation2 + $0x30] sm:$0xff]  ;;  %v200_v26 = vld [vmem:[#allocation2 + $0x28] sm:$0xff]  ;;  %v199_v27 = vld [vmem:[#allocation2 + $0x20] sm:$0xff] }
  0x25   :  { %2796 = vmatprep.subr.mxu0 %v3827_v1  ;;  %2849 = vmatprep.subr.mxu1 %v3827_v1  ;;  %v198_v28 = vld [vmem:[#allocation2 + $0x18] sm:$0xff]  ;;  %v197_v29 = vld [vmem:[#allocation2 + $0x10] sm:$0xff]  ;;  %v196_v30 = vld [vmem:[#allocation2 + $0x8] sm:$0xff] }
  0x26   :  { %2797 = vmatpush3.msra.mxu0 %v208_v10  ;;  %2850 = vmatpush3.msra.mxu1 %v208_v10  ;;  %v195_v31 = vld [vmem:[#allocation2] sm:$0xff]  ;;  %v448_v45 = vld [vmem:[#allocation2 + $0xf8] sm:$0xff]  ;;  %v447_v48 = vld [vmem:[#allocation2 + $0xf0] sm:$0xff] }
  0x27   :  { %118 = vperm.xlu1 %3755, %v101_v8   ;;  %76 = vperm.xlu0 %3754, %v59_v9   ;;  %v3965_v32 = vld [vmem:[%s4664_s1] ss:$0 sm:$0xff]  ;;  %v446_v56 = vld [vmem:[#allocation2 + $0xe8] sm:$0xff] }
  0x28   :  { %2798 = vmatprep.subr.mxu0 %v3827_v1  ;;  %2851 = vmatprep.subr.mxu1 %v3827_v1  ;;  %v3970_v34 = vld [vmem:[%s4665_s2] ss:$0 sm:$0xff] }
  0x29   :  { %2799 = vmatpush3.msra.mxu0 %v207_v13  ;;  %2852 = vmatpush3.msra.mxu1 %v207_v13  ;;  %v445_v2 = vld [vmem:[#allocation2 + $0xe0] sm:$0xff] }
  0x2a   :  { %2800 = vmatprep.subr.mxu0 %v3827_v1  ;;  %2853 = vmatprep.subr.mxu1 %v3827_v1 }
  0x2b   :  { %123 = vperm.xlu1 %3755, %v102_v11   ;;  %81 = vperm.xlu0 %3754, %v60_v12   ;;  %v444_v11 = vld [vmem:[#allocation2 + $0xd8] sm:$0xff] }
  0x2c   :  { %2801 = vmatpush3.msra.mxu0 %v206_v14  ;;  %2854 = vmatpush3.msra.mxu1 %v206_v14 }
  0x2d   :  { %2802 = vmatprep.subr.mxu0 %v3827_v1  ;;  %2855 = vmatprep.subr.mxu1 %v3827_v1 }
  0x2e   :  { %2803 = vmatpush3.msra.mxu0 %v205_v17  ;;  %2856 = vmatpush3.msra.mxu1 %v205_v17 }
  0x2f   :  { %128 = vperm.xlu1 %3755, %v103_v15   ;;  %86 = vperm.xlu0 %3754, %v61_v16  }
  0x30   :  { %2804 = vmatprep.subr.mxu0 %v3827_v1  ;;  %2857 = vmatprep.subr.mxu1 %v3827_v1 }
  0x31   :  { %2805 = vmatpush3.msra.mxu0 %v204_v20  ;;  %2858 = vmatpush3.msra.mxu1 %v204_v20  ;;  %v443_v20 = vld [vmem:[#allocation2 + $0xd0] sm:$0xff] }
  0x32   :  { %2806 = vmatprep.subr.mxu0 %v3827_v1  ;;  %2859 = vmatprep.subr.mxu1 %v3827_v1 }
  0x33   :  { %133 = vperm.xlu1 %3755, %v104_v18   ;;  %91 = vperm.xlu0 %3754, %v62_v19  }
  0x34   :  { %2807 = vmatpush3.msra.mxu0 %v203_v21  ;;  %2860 = vmatpush3.msra.mxu1 %v203_v21 }
  0x35   :  { %2808 = vmatprep.subr.mxu0 %v3827_v1  ;;  %2861 = vmatprep.subr.mxu1 %v3827_v1 }
  0x36   :  { %2809 = vmatpush3.msra.mxu0 %v202_v24  ;;  %2862 = vmatpush3.msra.mxu1 %v202_v24 }
  0x37   :  { %138 = vperm.xlu1 %3755, %v105_v22   ;;  %96 = vperm.xlu0 %3754, %v63_v23  }
  0x38   :  { %2810 = vmatprep.subr.mxu0 %v3827_v1  ;;  %2863 = vmatprep.subr.mxu1 %v3827_v1 }
  0x39   :  { %2811 = vmatpush3.msra.mxu0 %v201_v25  ;;  %2864 = vmatpush3.msra.mxu1 %v201_v25 }
  0x3a   :  { %2812 = vmatprep.subr.mxu0 %v3827_v1  ;;  %2865 = vmatprep.subr.mxu1 %v3827_v1 }
  0x3b   :  { %2813 = vmatpush3.msra.mxu0 %v200_v26  ;;  %2866 = vmatpush3.msra.mxu1 %v200_v26 }
  0x3c   :  { %2814 = vmatprep.subr.mxu0 %v3827_v1  ;;  %2867 = vmatprep.subr.mxu1 %v3827_v1 }
  0x3d   :  { %2815 = vmatpush3.msra.mxu0 %v199_v27  ;;  %2868 = vmatpush3.msra.mxu1 %v199_v27 }
  0x3e   :  { %2816 = vmatprep.subr.mxu0 %v3827_v1  ;;  %2869 = vmatprep.subr.mxu1 %v3827_v1 }
  0x3f   :  { %2817 = vmatpush3.msra.mxu0 %v198_v28  ;;  %2870 = vmatpush3.msra.mxu1 %v198_v28 }
  0x40   :  { %2818 = vmatprep.subr.mxu0 %v3827_v1  ;;  %2871 = vmatprep.subr.mxu1 %v3827_v1 }
  0x41   :  { %2819 = vmatpush3.msra.mxu0 %v197_v29  ;;  %2872 = vmatpush3.msra.mxu1 %v197_v29  ;;  %v442_v29 = vld [vmem:[#allocation2 + $0xc8] sm:$0xff] }
  0x42   :  { %2820 = vmatprep.subr.mxu0 %v3827_v1  ;;  %2873 = vmatprep.subr.mxu1 %v3827_v1 }
  0x43   :  { %2821 = vmatpush3.msra.mxu0 %v196_v30  ;;  %2874 = vmatpush3.msra.mxu1 %v196_v30 }
  0x44   :  { %2822 = vmatprep.subr.mxu0 %v3827_v1  ;;  %2875 = vmatprep.subr.mxu1 %v3827_v1 }
  0x45   :  { %2823 = vmatpush3.msra.mxu0 %v195_v31  ;;  %2876 = vmatpush3.msra.mxu1 %v195_v31 }
  0x46   :  { %2898 = vmatprep.subr.mxu0 %v3827_v1  ;;  %2951 = vmatprep.subr.mxu1 %v3827_v1 }
  0x9a   :  { %v72_v33 = vpop.permute.xlu1 %71  ;;  %v67_v35 = vpop.permute.xlu0 %66 }
  0x9b   :  { %v148_v36 = vmul.f32 %v3965_v32, %v72_v33  ;;  %v147_v37 = vmul.f32 %v3965_v32, %v67_v35  ;;  %v441_v33 = vld [vmem:[#allocation2 + $0xc0] sm:$0xff]  ;;  %v440_v35 = vld [vmem:[#allocation2 + $0xb8] sm:$0xff] }
  0x9d   :  { %v161_v38 = vadd.f32 %v3970_v34, %v148_v36  ;;  %v160_v39 = vadd.f32 %v3970_v34, %v147_v37  ;;  %v438_v37 = vld [vmem:[#allocation2 + $0xa8] sm:$0xff] }
  0x9e   :  { %v114_v40 = vpop.permute.xlu1 %113  ;;  %v109_v41 = vpop.permute.xlu0 %108 }
  0x9f   :  { %v167_v42 = vmax.f32 %v160_v39, 0.0  ;;  %v175_v43 = vmul.f32 %v3965_v32, %v114_v40  ;;  %v174_v44 = vmul.f32 %v3965_v32, %v109_v41  ;;  %v168_v46 = vmax.f32 %v161_v38, 0.0  ;;  %v437_v38 = vld [vmem:[#allocation2 + $0xa0] sm:$0xff]  ;;  %v436_v39 = vld [vmem:[#allocation2 + $0x98] sm:$0xff]  ;;  %v435_v40 = vld [vmem:[#allocation2 + $0x90] sm:$0xff] }
  0xa0   :  { %v434_v41 = vld [vmem:[#allocation2 + $0x88] sm:$0xff] }
  0xa1   :  { %v181_v47 = vadd.f32 %v3970_v34, %v174_v44  ;;  %2825 = vmatmul.mubr.f32.vlgmr.msra.gmra.mxu0 %v167_v42  ;;  %v182_v51 = vadd.f32 %v3970_v34, %v175_v43  ;;  %v433_v42 = vld [vmem:[#allocation2 + $0x80] sm:$0xff] }
  0xa2   :  { %v119_v49 = vpop.permute.xlu1 %118  ;;  %v77_v50 = vpop.permute.xlu0 %76  ;;  %2827 = vmatprep.mubr.msk.f32.mxu0 %vm3828_vm0, %v3827_v1  ;;  %2899 = vmatpush3.msra.mxu0 %v448_v45  ;;  %v4063_v43 = vld [vmem:[%s4667_s4] ss:$0 sm:$0xff] }
  0xa3   :  { %v188_v52 = vmax.f32 %v181_v47, 0.0  ;;  %v176_v53 = vmul.f32 %v3965_v32, %v119_v49  ;;  %v149_v54 = vmul.f32 %v3965_v32, %v77_v50  ;;  %2900 = vmatprep.subr.mxu0 %v3827_v1  ;;  %v189_v60 = vmax.f32 %v182_v51, 0.0 }
  0xa4   :  { %2901 = vmatpush3.msra.mxu0 %v447_v48 }
  0xa5   :  { %v162_v55 = vadd.f32 %v3970_v34, %v149_v54  ;;  %2828 = vmatmul.mubr.f32.gmra.mxu0 %v168_v46  ;;  %2878 = vmatmul.mubr.f32.vlgmr.msra.gmra.mxu1 %v188_v52  ;;  %v183_v57 = vadd.f32 %v3970_v34, %v176_v53  ;;  %v686_v53 = vld [vmem:[#allocation2 + $0x170] sm:$0xff] }
  0xa6   :  { %v124_v58 = vpop.permute.xlu1 %123  ;;  %v82_v59 = vpop.permute.xlu0 %81  ;;  %2830 = vmatprep.mubr.msk.f32.mxu0 %vm3828_vm0, %v3827_v1  ;;  %2880 = vmatprep.mubr.msk.f32.mxu1 %vm3828_vm0, %v3827_v1 }
  0xa7   :  { %v169_v61 = vmax.f32 %v162_v55, 0.0  ;;  %v177_v62 = vmul.f32 %v3965_v32, %v124_v58  ;;  %v150_v63 = vmul.f32 %v3965_v32, %v82_v59  ;;  %2902 = vmatprep.subr.mxu0 %v3827_v1  ;;  %2952 = vmatpush3.msra.mxu1 %v448_v45  ;;  %v190_v3 = vmax.f32 %v183_v57, 0.0 }
  0xa8   :  { %2903 = vmatpush3.msra.mxu0 %v446_v56  ;;  %2953 = vmatprep.subr.mxu1 %v3827_v1 }
  0xa9   :  { %v163_v0 = vadd.f32 %v3970_v34, %v150_v63  ;;  %2831 = vmatmul.mubr.f32.gmra.mxu0 %v169_v61  ;;  %2881 = vmatmul.mubr.f32.gmra.mxu1 %v189_v60  ;;  %v184_v6 = vadd.f32 %v3970_v34, %v177_v62  ;;  %v685_v62 = vld [vmem:[#allocation2 + $0x168] sm:$0xff] }
  0xaa   :  { %v129_v4 = vpop.permute.xlu1 %128  ;;  %v87_v5 = vpop.permute.xlu0 %86  ;;  %2833 = vmatprep.mubr.msk.f32.mxu0 %vm3828_vm0, %v3827_v1  ;;  %2883 = vmatprep.mubr.msk.f32.mxu1 %vm3828_vm0, %v3827_v1 }
  0xab   :  { %v170_v7 = vmax.f32 %v163_v0, 0.0  ;;  %v178_v8 = vmul.f32 %v3965_v32, %v129_v4  ;;  %v151_v9 = vmul.f32 %v3965_v32, %v87_v5  ;;  %2904 = vmatprep.subr.mxu0 %v3827_v1  ;;  %2954 = vmatpush3.msra.mxu1 %v447_v48  ;;  %v191_v15 = vmax.f32 %v184_v6, 0.0  ;;  %v687_v48 = vld [vmem:[#allocation2 + $0x178] sm:$0xff] }
  0xac   :  { %2905 = vmatpush3.msra.mxu0 %v445_v2  ;;  %2955 = vmatprep.subr.mxu1 %v3827_v1 }
  0xad   :  { %v164_v10 = vadd.f32 %v3970_v34, %v151_v9  ;;  %2834 = vmatmul.mubr.f32.gmra.mxu0 %v170_v7  ;;  %2884 = vmatmul.mubr.f32.gmra.mxu1 %v190_v3  ;;  %v185_v12 = vadd.f32 %v3970_v34, %v178_v8  ;;  %v684_v8 = vld [vmem:[#allocation2 + $0x160] sm:$0xff] }
  0xae   :  { %v134_v13 = vpop.permute.xlu1 %133  ;;  %v92_v14 = vpop.permute.xlu0 %91  ;;  %2836 = vmatprep.mubr.msk.f32.mxu0 %vm3828_vm0, %v3827_v1  ;;  %2886 = vmatprep.mubr.msk.f32.mxu1 %vm3828_vm0, %v3827_v1 }
  0xaf   :  { %v171_v16 = vmax.f32 %v164_v10, 0.0  ;;  %v179_v17 = vmul.f32 %v3965_v32, %v134_v13  ;;  %v152_v18 = vmul.f32 %v3965_v32, %v92_v14  ;;  %2906 = vmatprep.subr.mxu0 %v3827_v1  ;;  %2956 = vmatpush3.msra.mxu1 %v446_v56  ;;  %v192_v21 = vmax.f32 %v185_v12, 0.0 }
  0xb0   :  { %2907 = vmatpush3.msra.mxu0 %v444_v11  ;;  %2957 = vmatprep.subr.mxu1 %v3827_v1 }
  0xb1   :  { %v165_v19 = vadd.f32 %v3970_v34, %v152_v18  ;;  %2837 = vmatmul.mubr.f32.gmra.mxu0 %v171_v16  ;;  %2887 = vmatmul.mubr.f32.gmra.mxu1 %v191_v15  ;;  %v186_v24 = vadd.f32 %v3970_v34, %v179_v17  ;;  %v683_v17 = vld [vmem:[#allocation2 + $0x158] sm:$0xff] }
  0xb2   :  { %v139_v22 = vpop.permute.xlu1 %138  ;;  %v97_v23 = vpop.permute.xlu0 %96  ;;  %2839 = vmatprep.mubr.msk.f32.mxu0 %vm3828_vm0, %v3827_v1  ;;  %2889 = vmatprep.mubr.msk.f32.mxu1 %vm3828_vm0, %v3827_v1 }
  0xb3   :  { %v172_v25 = vmax.f32 %v165_v19, 0.0  ;;  %v180_v26 = vmul.f32 %v3965_v32, %v139_v22  ;;  %v153_v27 = vmul.f32 %v3965_v32, %v97_v23  ;;  %2908 = vmatprep.subr.mxu0 %v3827_v1  ;;  %2958 = vmatpush3.msra.mxu1 %v445_v2  ;;  %v193_v30 = vmax.f32 %v186_v24, 0.0 }
  0xb4   :  { %2909 = vmatpush3.msra.mxu0 %v443_v20  ;;  %2959 = vmatprep.subr.mxu1 %v3827_v1 }
  0xb5   :  { %v166_v28 = vadd.f32 %v3970_v34, %v153_v27  ;;  %2840 = vmatmul.mubr.f32.gmra.mxu0 %v172_v25  ;;  %2890 = vmatmul.mubr.f32.gmra.mxu1 %v192_v21  ;;  %v187_v31 = vadd.f32 %v3970_v34, %v180_v26  ;;  %v439_v34 = vld [vmem:[#allocation2 + $0xb0] sm:$0xff] }
  0xb6   :  { %2842 = vmatprep.mubr.msk.f32.mxu0 %vm3828_vm0, %v3827_v1  ;;  %2892 = vmatprep.mubr.msk.f32.mxu1 %vm3828_vm0, %v3827_v1  ;;  %v682_v26 = vld [vmem:[#allocation2 + $0x150] sm:$0xff] }
  0xb7   :  { %v173_v32 = vmax.f32 %v166_v28, 0.0  ;;  %2910 = vmatprep.subr.mxu0 %v3827_v1  ;;  %2960 = vmatpush3.msra.mxu1 %v444_v11  ;;  %v194_v36 = vmax.f32 %v187_v31, 0.0 }
  0xb8   :  { %2911 = vmatpush3.msra.mxu0 %v442_v29  ;;  %2961 = vmatprep.subr.mxu1 %v3827_v1 }
  0xb9   :  { %2843 = vmatmul.mubr.f32.gmra.mxu0 %v173_v32  ;;  %2893 = vmatmul.mubr.f32.gmra.mxu1 %v193_v30 }
  0xba   :  { %2895 = vmatprep.mubr.msk.f32.mxu1 %vm3828_vm0, %v3827_v1  ;;  %2912 = vmatprep.subr.mxu0 %v3827_v1 }
  0xbb   :  { %2913 = vmatpush3.msra.mxu0 %v441_v33  ;;  %2962 = vmatpush3.msra.mxu1 %v443_v20 }
  0xbc   :  { %2914 = vmatprep.subr.mxu0 %v3827_v1  ;;  %2963 = vmatprep.subr.mxu1 %v3827_v1 }
  0xbd   :  { %2896 = vmatmul.mubr.f32.gmra.mxu1 %v194_v36  ;;  %2915 = vmatpush3.msra.mxu0 %v440_v35  ;;  %v681_v36 = vld [vmem:[#allocation2 + $0x148] sm:$0xff] }
  0xbe   :  { %2964 = vmatpush3.msra.mxu1 %v442_v29  ;;  %2916 = vmatprep.subr.mxu0 %v3827_v1 }
  0xbf   :  { %2965 = vmatprep.subr.mxu1 %v3827_v1  ;;  %2917 = vmatpush3.msra.mxu0 %v439_v34 }
  0xc0   :  { %2966 = vmatpush3.msra.mxu1 %v441_v33  ;;  %2918 = vmatprep.subr.mxu0 %v3827_v1 }
  0xc1   :  { %2967 = vmatprep.subr.mxu1 %v3827_v1  ;;  %2919 = vmatpush3.msra.mxu0 %v438_v37 }
  0xc2   :  { %2968 = vmatpush3.msra.mxu1 %v440_v35  ;;  %2920 = vmatprep.subr.mxu0 %v3827_v1 }
  0xc3   :  { %2969 = vmatprep.subr.mxu1 %v3827_v1  ;;  %2921 = vmatpush3.msra.mxu0 %v437_v38 }
  0xc4   :  { %2970 = vmatpush3.msra.mxu1 %v439_v34  ;;  %2922 = vmatprep.subr.mxu0 %v3827_v1 }
  0xc5   :  { %2971 = vmatprep.subr.mxu1 %v3827_v1  ;;  %2923 = vmatpush3.msra.mxu0 %v436_v39 }
  0xc6   :  { %2972 = vmatpush3.msra.mxu1 %v438_v37  ;;  %2924 = vmatprep.subr.mxu0 %v3827_v1 }
  0xc7   :  { %2973 = vmatprep.subr.mxu1 %v3827_v1  ;;  %2930 = vmatprep.mubr.msk.f32.mxu0 %vm3828_vm0, %v3827_v1 }
  0xc8   :  { %2974 = vmatpush3.msra.mxu1 %v437_v38  ;;  %2983 = vmatprep.mubr.msk.f32.mxu1 %vm3828_vm0, %v3827_v1 }
  0xc9   :  { %2975 = vmatprep.subr.mxu1 %v3827_v1  ;;  %2925 = vmatpush3.msra.mxu0 %v435_v40 }
  0xca   :  { %2976 = vmatpush3.msra.mxu1 %v436_v39  ;;  %2926 = vmatprep.subr.mxu0 %v3827_v1 }
  0xcb   :  { %2977 = vmatprep.subr.mxu1 %v3827_v1  ;;  %2927 = vmatpush3.msra.mxu0 %v434_v41 }
  0xcc   :  { %2978 = vmatpush3.msra.mxu1 %v435_v40  ;;  %2928 = vmatprep.subr.mxu0 %v3827_v1 }
  0xcd   :  { %2979 = vmatprep.subr.mxu1 %v3827_v1  ;;  %2929 = vmatpush3.msra.mxu0 %v433_v42 }
  0xce   :  { %2980 = vmatpush3.msra.mxu1 %v434_v41  ;;  %3004 = vmatprep.subr.mxu0 %v3827_v1  ;;  %v680_v41 = vld [vmem:[#allocation2 + $0x140] sm:$0xff] }
  0xcf   :  { %2981 = vmatprep.subr.mxu1 %v3827_v1 }
  0xd0   :  { %2982 = vmatpush3.msra.mxu1 %v433_v42 }
  0xd1   :  { %3057 = vmatprep.subr.mxu1 %v3827_v1 }
 0x161   :  { %v284_v44 = vpop.f32.mrf.mxu0 }
 0x162   :  { %v285_v45 = vadd.f32 %v4063_v43, %v284_v44 }
 0x163   :  { %v2826_v46 = vpop.f32.mrf.mxu0 }
 0x164   :  { %v318_v47 = vmax.f32 %v285_v45, 0.0  ;;  %v679_v45 = vld [vmem:[#allocation2 + $0x138] sm:$0xff] }
 0x165   :  { %v289_v49 = vpop.f32.mrf.mxu0  ;;  %v391_v50 = vpop.f32.mrf.mxu1 }
 0x166   :  { %v290_v51 = vadd.f32 %v4063_v43, %v289_v49  ;;  %v392_v52 = vadd.f32 %v4063_v43, %v391_v50  ;;  %2931 = vmatmul.mubr.f32.vlgmr.msra.gmra.mxu0 %v318_v47  ;;  %v678_v47 = vld [vmem:[#allocation2 + $0x130] sm:$0xff]  ;;  %v675_v49 = vld [vmem:[#allocation2 + $0x118] sm:$0xff] }
 0x167   :  { %v2829_v54 = vpop.f32.mrf.mxu0  ;;  %v2879_v55 = vpop.f32.mrf.mxu1  ;;  %2933 = vmatprep.mubr.msk.f32.mxu0 %vm3828_vm0, %v3827_v1  ;;  %3005 = vmatpush3.msra.mxu0 %v687_v48  ;;  %v674_v50 = vld [vmem:[#allocation2 + $0x110] sm:$0xff] }
 0x168   :  { %v319_v56 = vmax.f32 %v290_v51, 0.0  ;;  %v425_v57 = vmax.f32 %v392_v52, 0.0  ;;  %3006 = vmatprep.subr.mxu0 %v3827_v1  ;;  %v673_v51 = vld [vmem:[#allocation2 + $0x108] sm:$0xff]  ;;  %v672_v52 = vld [vmem:[#allocation2 + $0x100] sm:$0xff] }
 0x169   :  { %v294_v58 = vpop.f32.mrf.mxu0  ;;  %v396_v59 = vpop.f32.mrf.mxu1  ;;  %3007 = vmatpush3.msra.mxu0 %v686_v53 }
 0x16a   :  { %v295_v60 = vadd.f32 %v4063_v43, %v294_v58  ;;  %v397_v61 = vadd.f32 %v4063_v43, %v396_v59  ;;  %2934 = vmatmul.mubr.f32.gmra.mxu0 %v319_v56  ;;  %2984 = vmatmul.mubr.f32.vlgmr.msra.gmra.mxu1 %v425_v57  ;;  %v926_v58 = vld [vmem:[#allocation2 + $0x1f8] sm:$0xff] }
 0x16b   :  { %v2832_v63 = vpop.f32.mrf.mxu0  ;;  %v2882_v0 = vpop.f32.mrf.mxu1  ;;  %2936 = vmatprep.mubr.msk.f32.mxu0 %vm3828_vm0, %v3827_v1  ;;  %2986 = vmatprep.mubr.msk.f32.mxu1 %vm3828_vm0, %v3827_v1 }
 0x16c   :  { %v320_v2 = vmax.f32 %v295_v60, 0.0  ;;  %v426_v3 = vmax.f32 %v397_v61, 0.0  ;;  %3008 = vmatprep.subr.mxu0 %v3827_v1  ;;  %3058 = vmatpush3.msra.mxu1 %v687_v48  ;;  %v676_v48 = vld [vmem:[#allocation2 + $0x120] sm:$0xff]  ;;  %v925_v63 = vld [vmem:[#allocation2 + $0x1f0] sm:$0xff] }
 0x16d   :  { %v299_v4 = vpop.f32.mrf.mxu0  ;;  %v401_v5 = vpop.f32.mrf.mxu1  ;;  %3009 = vmatpush3.msra.mxu0 %v685_v62  ;;  %3059 = vmatprep.subr.mxu1 %v3827_v1 }
 0x16e   :  { %v300_v6 = vadd.f32 %v4063_v43, %v299_v4  ;;  %v402_v7 = vadd.f32 %v4063_v43, %v401_v5  ;;  %2937 = vmatmul.mubr.f32.gmra.mxu0 %v320_v2  ;;  %2987 = vmatmul.mubr.f32.gmra.mxu1 %v426_v3 }
 0x16f   :  { %v2835_v9 = vpop.f32.mrf.mxu0  ;;  %v2885_v10 = vpop.f32.mrf.mxu1  ;;  %2939 = vmatprep.mubr.msk.f32.mxu0 %vm3828_vm0, %v3827_v1  ;;  %2989 = vmatprep.mubr.msk.f32.mxu1 %vm3828_vm0, %v3827_v1 }
 0x170   :  { %v321_v11 = vmax.f32 %v300_v6, 0.0  ;;  %v427_v12 = vmax.f32 %v402_v7, 0.0  ;;  %3010 = vmatprep.subr.mxu0 %v3827_v1  ;;  %3060 = vmatpush3.msra.mxu1 %v686_v53  ;;  %v4142_v53 = vld [vmem:[%s4667_s4 + $0x1] ss:$0 sm:$0xff]  ;;  %v924_v9 = vld [vmem:[#allocation2 + $0x1e8] sm:$0xff] }
 0x171   :  { %v304_v13 = vpop.f32.mrf.mxu0  ;;  %v406_v14 = vpop.f32.mrf.mxu1  ;;  %3011 = vmatpush3.msra.mxu0 %v684_v8  ;;  %3061 = vmatprep.subr.mxu1 %v3827_v1 }
 0x172   :  { %v305_v15 = vadd.f32 %v4063_v43, %v304_v13  ;;  %v407_v16 = vadd.f32 %v4063_v43, %v406_v14  ;;  %2940 = vmatmul.mubr.f32.gmra.mxu0 %v321_v11  ;;  %2990 = vmatmul.mubr.f32.gmra.mxu1 %v427_v12 }
 0x173   :  { %v2838_v18 = vpop.f32.mrf.mxu0  ;;  %v2888_v19 = vpop.f32.mrf.mxu1  ;;  %2942 = vmatprep.mubr.msk.f32.mxu0 %vm3828_vm0, %v3827_v1  ;;  %2992 = vmatprep.mubr.msk.f32.mxu1 %vm3828_vm0, %v3827_v1 }
 0x174   :  { %v322_v20 = vmax.f32 %v305_v15, 0.0  ;;  %v428_v21 = vmax.f32 %v407_v16, 0.0  ;;  %3012 = vmatprep.subr.mxu0 %v3827_v1  ;;  %3062 = vmatpush3.msra.mxu1 %v685_v62  ;;  %v923_v18 = vld [vmem:[#allocation2 + $0x1e0] sm:$0xff] }
 0x175   :  { %v309_v22 = vpop.f32.mrf.mxu0  ;;  %v411_v23 = vpop.f32.mrf.mxu1  ;;  %3013 = vmatpush3.msra.mxu0 %v683_v17  ;;  %3063 = vmatprep.subr.mxu1 %v3827_v1 }
 0x176   :  { %v310_v24 = vadd.f32 %v4063_v43, %v309_v22  ;;  %v412_v25 = vadd.f32 %v4063_v43, %v411_v23  ;;  %2943 = vmatmul.mubr.f32.gmra.mxu0 %v322_v20  ;;  %2993 = vmatmul.mubr.f32.gmra.mxu1 %v428_v21 }
 0x177   :  { %v2841_v27 = vpop.f32.mrf.mxu0  ;;  %v2891_v28 = vpop.f32.mrf.mxu1  ;;  %2945 = vmatprep.mubr.msk.f32.mxu0 %vm3828_vm0, %v3827_v1  ;;  %2995 = vmatprep.mubr.msk.f32.mxu1 %vm3828_vm0, %v3827_v1 }
 0x178   :  { %v323_v29 = vmax.f32 %v310_v24, 0.0  ;;  %v429_v30 = vmax.f32 %v412_v25, 0.0  ;;  %3014 = vmatprep.subr.mxu0 %v3827_v1  ;;  %3064 = vmatpush3.msra.mxu1 %v684_v8  ;;  %v922_v27 = vld [vmem:[#allocation2 + $0x1d8] sm:$0xff] }
 0x179   :  { %v314_v31 = vpop.f32.mrf.mxu0  ;;  %v416_v32 = vpop.f32.mrf.mxu1  ;;  %3015 = vmatpush3.msra.mxu0 %v682_v26  ;;  %3065 = vmatprep.subr.mxu1 %v3827_v1 }
 0x17a   :  { %v315_v33 = vadd.f32 %v4063_v43, %v314_v31  ;;  %v417_v35 = vadd.f32 %v4063_v43, %v416_v32  ;;  %2946 = vmatmul.mubr.f32.gmra.mxu0 %v323_v29  ;;  %2996 = vmatmul.mubr.f32.gmra.mxu1 %v429_v30 }
 0x17b   :  { %v2844_v34 = vpop.f32.mrf.mxu0  ;;  %v2894_v37 = vpop.f32.mrf.mxu1  ;;  %2948 = vmatprep.mubr.msk.f32.mxu0 %vm3828_vm0, %v3827_v1  ;;  %2998 = vmatprep.mubr.msk.f32.mxu1 %vm3828_vm0, %v3827_v1 }
 0x17c   :  { %v324_v38 = vmax.f32 %v315_v33, 0.0  ;;  %v430_v39 = vmax.f32 %v417_v35, 0.0  ;;  %3016 = vmatprep.subr.mxu0 %v3827_v1  ;;  %3066 = vmatpush3.msra.mxu1 %v683_v17  ;;  %v921_v34 = vld [vmem:[#allocation2 + $0x1d0] sm:$0xff] }
 0x17d   :  { %v421_v40 = vpop.f32.mrf.mxu1  ;;  %3017 = vmatpush3.msra.mxu0 %v681_v36  ;;  %3067 = vmatprep.subr.mxu1 %v3827_v1 }
 0x17e   :  { %v422_v42 = vadd.f32 %v4063_v43, %v421_v40  ;;  %2949 = vmatmul.mubr.f32.gmra.mxu0 %v324_v38  ;;  %2999 = vmatmul.mubr.f32.gmra.mxu1 %v430_v39  ;;  %v677_v43 = vld [vmem:[#allocation2 + $0x128] sm:$0xff] }
 0x17f   :  { %v2897_v44 = vpop.f32.mrf.mxu1  ;;  %3001 = vmatprep.mubr.msk.f32.mxu1 %vm3828_vm0, %v3827_v1  ;;  %3018 = vmatprep.subr.mxu0 %v3827_v1 }
 0x180   :  { %v431_v46 = vmax.f32 %v422_v42, 0.0  ;;  %3019 = vmatpush3.msra.mxu0 %v680_v41  ;;  %3068 = vmatpush3.msra.mxu1 %v682_v26 }
 0x181   :  { %3020 = vmatprep.subr.mxu0 %v3827_v1  ;;  %3069 = vmatprep.subr.mxu1 %v3827_v1 }
 0x182   :  { %3002 = vmatmul.mubr.f32.gmra.mxu1 %v431_v46  ;;  %3021 = vmatpush3.msra.mxu0 %v679_v45  ;;  %v920_v46 = vld [vmem:[#allocation2 + $0x1c8] sm:$0xff] }
 0x183   :  { %3070 = vmatpush3.msra.mxu1 %v681_v36  ;;  %3022 = vmatprep.subr.mxu0 %v3827_v1 }
 0x184   :  { %3071 = vmatprep.subr.mxu1 %v3827_v1  ;;  %3023 = vmatpush3.msra.mxu0 %v678_v47 }
 0x185   :  { %3072 = vmatpush3.msra.mxu1 %v680_v41  ;;  %3024 = vmatprep.subr.mxu0 %v3827_v1 }
 0x186   :  { %3073 = vmatprep.subr.mxu1 %v3827_v1  ;;  %3025 = vmatpush3.msra.mxu0 %v677_v43 }
 0x187   :  { %3074 = vmatpush3.msra.mxu1 %v679_v45  ;;  %3026 = vmatprep.subr.mxu0 %v3827_v1 }
 0x188   :  { %3075 = vmatprep.subr.mxu1 %v3827_v1  ;;  %3027 = vmatpush3.msra.mxu0 %v676_v48 }
 0x189   :  { %3076 = vmatpush3.msra.mxu1 %v678_v47  ;;  %3028 = vmatprep.subr.mxu0 %v3827_v1 }
 0x18a   :  { %3077 = vmatprep.subr.mxu1 %v3827_v1  ;;  %3029 = vmatpush3.msra.mxu0 %v675_v49 }
 0x18b   :  { %3078 = vmatpush3.msra.mxu1 %v677_v43  ;;  %3030 = vmatprep.subr.mxu0 %v3827_v1 }
 0x18c   :  { %3079 = vmatprep.subr.mxu1 %v3827_v1  ;;  %3036 = vmatprep.mubr.msk.f32.mxu0 %vm3828_vm0, %v3827_v1 }
 0x18d   :  { %3080 = vmatpush3.msra.mxu1 %v676_v48  ;;  %3089 = vmatprep.mubr.msk.f32.mxu1 %vm3828_vm0, %v3827_v1 }
 0x18e   :  { %3081 = vmatprep.subr.mxu1 %v3827_v1  ;;  %3031 = vmatpush3.msra.mxu0 %v674_v50 }
 0x18f   :  { %3082 = vmatpush3.msra.mxu1 %v675_v49  ;;  %3032 = vmatprep.subr.mxu0 %v3827_v1 }
 0x190   :  { %3083 = vmatprep.subr.mxu1 %v3827_v1  ;;  %3033 = vmatpush3.msra.mxu0 %v673_v51 }
 0x191   :  { %3084 = vmatpush3.msra.mxu1 %v674_v50  ;;  %3034 = vmatprep.subr.mxu0 %v3827_v1 }
 0x192   :  { %3085 = vmatprep.subr.mxu1 %v3827_v1  ;;  %3035 = vmatpush3.msra.mxu0 %v672_v52 }
 0x193   :  { %3086 = vmatpush3.msra.mxu1 %v673_v51  ;;  %3110 = vmatprep.subr.mxu0 %v3827_v1  ;;  %v919_v51 = vld [vmem:[#allocation2 + $0x1c0] sm:$0xff] }
 0x194   :  { %3087 = vmatprep.subr.mxu1 %v3827_v1 }
 0x195   :  { %3088 = vmatpush3.msra.mxu1 %v672_v52 }
 0x196   :  { %3163 = vmatprep.subr.mxu1 %v3827_v1 }
 0x226   :  { %v523_v54 = vpop.f32.mrf.mxu0 }
 0x227   :  { %v524_v55 = vadd.f32 %v4142_v53, %v523_v54 }
 0x228   :  { %v2932_v56 = vpop.f32.mrf.mxu0 }
 0x229   :  { %v557_v57 = vmax.f32 %v524_v55, 0.0  ;;  %v918_v55 = vld [vmem:[#allocation2 + $0x1b8] sm:$0xff] }
 0x22a   :  { %v528_v59 = vpop.f32.mrf.mxu0  ;;  %v630_v60 = vpop.f32.mrf.mxu1 }
 0x22b   :  { %v529_v61 = vadd.f32 %v4142_v53, %v528_v59  ;;  %v631_v62 = vadd.f32 %v4142_v53, %v630_v60  ;;  %3037 = vmatmul.mubr.f32.vlgmr.msra.gmra.mxu0 %v557_v57  ;;  %v917_v57 = vld [vmem:[#allocation2 + $0x1b0] sm:$0xff]  ;;  %v914_v59 = vld [vmem:[#allocation2 + $0x198] sm:$0xff] }
 0x22c   :  { %v2935_v0 = vpop.f32.mrf.mxu0  ;;  %v2985_v2 = vpop.f32.mrf.mxu1  ;;  %3039 = vmatprep.mubr.msk.f32.mxu0 %vm3828_vm0, %v3827_v1  ;;  %3111 = vmatpush3.msra.mxu0 %v926_v58  ;;  %v913_v60 = vld [vmem:[#allocation2 + $0x190] sm:$0xff] }
 0x22d   :  { %v558_v3 = vmax.f32 %v529_v61, 0.0  ;;  %v664_v4 = vmax.f32 %v631_v62, 0.0  ;;  %3112 = vmatprep.subr.mxu0 %v3827_v1  ;;  %v912_v61 = vld [vmem:[#allocation2 + $0x188] sm:$0xff]  ;;  %v911_v62 = vld [vmem:[#allocation2 + $0x180] sm:$0xff] }
 0x22e   :  { %v533_v5 = vpop.f32.mrf.mxu0  ;;  %v635_v6 = vpop.f32.mrf.mxu1  ;;  %3113 = vmatpush3.msra.mxu0 %v925_v63 }
 0x22f   :  { %v534_v7 = vadd.f32 %v4142_v53, %v533_v5  ;;  %v636_v8 = vadd.f32 %v4142_v53, %v635_v6  ;;  %3040 = vmatmul.mubr.f32.gmra.mxu0 %v558_v3  ;;  %3090 = vmatmul.mubr.f32.vlgmr.msra.gmra.mxu1 %v664_v4  ;;  %v1165_v5 = vld [vmem:[#allocation2 + $0x278] sm:$0xff] }
 0x230   :  { %v2938_v10 = vpop.f32.mrf.mxu0  ;;  %v2988_v11 = vpop.f32.mrf.mxu1  ;;  %3042 = vmatprep.mubr.msk.f32.mxu0 %vm3828_vm0, %v3827_v1  ;;  %3092 = vmatprep.mubr.msk.f32.mxu1 %vm3828_vm0, %v3827_v1 }
 0x231   :  { %v559_v12 = vmax.f32 %v534_v7, 0.0  ;;  %v665_v13 = vmax.f32 %v636_v8, 0.0  ;;  %3114 = vmatprep.subr.mxu0 %v3827_v1  ;;  %3164 = vmatpush3.msra.mxu1 %v926_v58  ;;  %v915_v58 = vld [vmem:[#allocation2 + $0x1a0] sm:$0xff]  ;;  %v1164_v10 = vld [vmem:[#allocation2 + $0x270] sm:$0xff] }
 0x232   :  { %v538_v14 = vpop.f32.mrf.mxu0  ;;  %v640_v15 = vpop.f32.mrf.mxu1  ;;  %3115 = vmatpush3.msra.mxu0 %v924_v9  ;;  %3165 = vmatprep.subr.mxu1 %v3827_v1 }
 0x233   :  { %v539_v16 = vadd.f32 %v4142_v53, %v538_v14  ;;  %v641_v17 = vadd.f32 %v4142_v53, %v640_v15  ;;  %3043 = vmatmul.mubr.f32.gmra.mxu0 %v559_v12  ;;  %3093 = vmatmul.mubr.f32.gmra.mxu1 %v665_v13 }
 0x234   :  { %v2941_v19 = vpop.f32.mrf.mxu0  ;;  %v2991_v20 = vpop.f32.mrf.mxu1  ;;  %3045 = vmatprep.mubr.msk.f32.mxu0 %vm3828_vm0, %v3827_v1  ;;  %3095 = vmatprep.mubr.msk.f32.mxu1 %vm3828_vm0, %v3827_v1 }
 0x235   :  { %v560_v21 = vmax.f32 %v539_v16, 0.0  ;;  %v666_v22 = vmax.f32 %v641_v17, 0.0  ;;  %3116 = vmatprep.subr.mxu0 %v3827_v1  ;;  %3166 = vmatpush3.msra.mxu1 %v925_v63  ;;  %v4221_v63 = vld [vmem:[%s4667_s4 + $0x2] ss:$0 sm:$0xff]  ;;  %v1163_v19 = vld [vmem:[#allocation2 + $0x268] sm:$0xff] }
 0x236   :  { %v543_v23 = vpop.f32.mrf.mxu0  ;;  %v645_v24 = vpop.f32.mrf.mxu1  ;;  %3117 = vmatpush3.msra.mxu0 %v923_v18  ;;  %3167 = vmatprep.subr.mxu1 %v3827_v1 }
 0x237   :  { %v544_v25 = vadd.f32 %v4142_v53, %v543_v23  ;;  %v646_v26 = vadd.f32 %v4142_v53, %v645_v24  ;;  %3046 = vmatmul.mubr.f32.gmra.mxu0 %v560_v21  ;;  %3096 = vmatmul.mubr.f32.gmra.mxu1 %v666_v22 }
 0x238   :  { %v2944_v28 = vpop.f32.mrf.mxu0  ;;  %v2994_v29 = vpop.f32.mrf.mxu1  ;;  %3048 = vmatprep.mubr.msk.f32.mxu0 %vm3828_vm0, %v3827_v1  ;;  %3098 = vmatprep.mubr.msk.f32.mxu1 %vm3828_vm0, %v3827_v1 }
 0x239   :  { %v561_v30 = vmax.f32 %v544_v25, 0.0  ;;  %v667_v31 = vmax.f32 %v646_v26, 0.0  ;;  %3118 = vmatprep.subr.mxu0 %v3827_v1  ;;  %3168 = vmatpush3.msra.mxu1 %v924_v9  ;;  %v1162_v28 = vld [vmem:[#allocation2 + $0x260] sm:$0xff] }
 0x23a   :  { %v548_v32 = vpop.f32.mrf.mxu0  ;;  %v650_v33 = vpop.f32.mrf.mxu1  ;;  %3119 = vmatpush3.msra.mxu0 %v922_v27  ;;  %3169 = vmatprep.subr.mxu1 %v3827_v1 }
 0x23b   :  { %v549_v35 = vadd.f32 %v4142_v53, %v548_v32  ;;  %v651_v36 = vadd.f32 %v4142_v53, %v650_v33  ;;  %3049 = vmatmul.mubr.f32.gmra.mxu0 %v561_v30  ;;  %3099 = vmatmul.mubr.f32.gmra.mxu1 %v667_v31 }
 0x23c   :  { %v2947_v37 = vpop.f32.mrf.mxu0  ;;  %v2997_v38 = vpop.f32.mrf.mxu1  ;;  %3051 = vmatprep.mubr.msk.f32.mxu0 %vm3828_vm0, %v3827_v1  ;;  %3101 = vmatprep.mubr.msk.f32.mxu1 %vm3828_vm0, %v3827_v1 }
 0x23d   :  { %v562_v39 = vmax.f32 %v549_v35, 0.0  ;;  %v668_v40 = vmax.f32 %v651_v36, 0.0  ;;  %3120 = vmatprep.subr.mxu0 %v3827_v1  ;;  %3170 = vmatpush3.msra.mxu1 %v923_v18  ;;  %v1161_v37 = vld [vmem:[#allocation2 + $0x258] sm:$0xff] }
 0x23e   :  { %v553_v41 = vpop.f32.mrf.mxu0  ;;  %v655_v42 = vpop.f32.mrf.mxu1  ;;  %3121 = vmatpush3.msra.mxu0 %v921_v34  ;;  %3171 = vmatprep.subr.mxu1 %v3827_v1 }
 0x23f   :  { %v554_v44 = vadd.f32 %v4142_v53, %v553_v41  ;;  %v656_v45 = vadd.f32 %v4142_v53, %v655_v42  ;;  %3052 = vmatmul.mubr.f32.gmra.mxu0 %v562_v39  ;;  %3102 = vmatmul.mubr.f32.gmra.mxu1 %v668_v40 }
 0x240   :  { %v2950_v47 = vpop.f32.mrf.mxu0  ;;  %v3000_v43 = vpop.f32.mrf.mxu1  ;;  %3054 = vmatprep.mubr.msk.f32.mxu0 %vm3828_vm0, %v3827_v1  ;;  %3104 = vmatprep.mubr.msk.f32.mxu1 %vm3828_vm0, %v3827_v1 }
 0x241   :  { %v563_v48 = vmax.f32 %v554_v44, 0.0  ;;  %v669_v49 = vmax.f32 %v656_v45, 0.0  ;;  %3122 = vmatprep.subr.mxu0 %v3827_v1  ;;  %3172 = vmatpush3.msra.mxu1 %v922_v27  ;;  %v1160_v47 = vld [vmem:[#allocation2 + $0x250] sm:$0xff] }
 0x242   :  { %v660_v50 = vpop.f32.mrf.mxu1  ;;  %3123 = vmatpush3.msra.mxu0 %v920_v46  ;;  %3173 = vmatprep.subr.mxu1 %v3827_v1 }
 0x243   :  { %v661_v52 = vadd.f32 %v4142_v53, %v660_v50  ;;  %3055 = vmatmul.mubr.f32.gmra.mxu0 %v563_v48  ;;  %3105 = vmatmul.mubr.f32.gmra.mxu1 %v669_v49  ;;  %v916_v53 = vld [vmem:[#allocation2 + $0x1a8] sm:$0xff] }
 0x244   :  { %v3003_v54 = vpop.f32.mrf.mxu1  ;;  %3107 = vmatprep.mubr.msk.f32.mxu1 %vm3828_vm0, %v3827_v1  ;;  %3124 = vmatprep.subr.mxu0 %v3827_v1 }
 0x245   :  { %v670_v56 = vmax.f32 %v661_v52, 0.0  ;;  %3125 = vmatpush3.msra.mxu0 %v919_v51  ;;  %3174 = vmatpush3.msra.mxu1 %v921_v34 }
 0x246   :  { %3126 = vmatprep.subr.mxu0 %v3827_v1  ;;  %3175 = vmatprep.subr.mxu1 %v3827_v1 }
 0x247   :  { %3108 = vmatmul.mubr.f32.gmra.mxu1 %v670_v56  ;;  %3127 = vmatpush3.msra.mxu0 %v918_v55  ;;  %v1159_v56 = vld [vmem:[#allocation2 + $0x248] sm:$0xff] }
 0x248   :  { %3176 = vmatpush3.msra.mxu1 %v920_v46  ;;  %3128 = vmatprep.subr.mxu0 %v3827_v1 }
 0x249   :  { %3177 = vmatprep.subr.mxu1 %v3827_v1  ;;  %3129 = vmatpush3.msra.mxu0 %v917_v57 }
 0x24a   :  { %3178 = vmatpush3.msra.mxu1 %v919_v51  ;;  %3130 = vmatprep.subr.mxu0 %v3827_v1 }
 0x24b   :  { %3179 = vmatprep.subr.mxu1 %v3827_v1  ;;  %3131 = vmatpush3.msra.mxu0 %v916_v53 }
 0x24c   :  { %3180 = vmatpush3.msra.mxu1 %v918_v55  ;;  %3132 = vmatprep.subr.mxu0 %v3827_v1 }
 0x24d   :  { %3181 = vmatprep.subr.mxu1 %v3827_v1  ;;  %3133 = vmatpush3.msra.mxu0 %v915_v58 }
 0x24e   :  { %3182 = vmatpush3.msra.mxu1 %v917_v57  ;;  %3134 = vmatprep.subr.mxu0 %v3827_v1 }
 0x24f   :  { %3183 = vmatprep.subr.mxu1 %v3827_v1  ;;  %3135 = vmatpush3.msra.mxu0 %v914_v59 }
 0x250   :  { %3184 = vmatpush3.msra.mxu1 %v916_v53  ;;  %3136 = vmatprep.subr.mxu0 %v3827_v1 }
 0x251   :  { %3185 = vmatprep.subr.mxu1 %v3827_v1  ;;  %3142 = vmatprep.mubr.msk.f32.mxu0 %vm3828_vm0, %v3827_v1 }
 0x252   :  { %3186 = vmatpush3.msra.mxu1 %v915_v58  ;;  %3195 = vmatprep.mubr.msk.f32.mxu1 %vm3828_vm0, %v3827_v1 }
 0x253   :  { %3187 = vmatprep.subr.mxu1 %v3827_v1  ;;  %3137 = vmatpush3.msra.mxu0 %v913_v60 }
 0x254   :  { %3188 = vmatpush3.msra.mxu1 %v914_v59  ;;  %3138 = vmatprep.subr.mxu0 %v3827_v1 }
 0x255   :  { %3189 = vmatprep.subr.mxu1 %v3827_v1  ;;  %3139 = vmatpush3.msra.mxu0 %v912_v61 }
 0x256   :  { %3190 = vmatpush3.msra.mxu1 %v913_v60  ;;  %3140 = vmatprep.subr.mxu0 %v3827_v1 }
 0x257   :  { %3191 = vmatprep.subr.mxu1 %v3827_v1  ;;  %3141 = vmatpush3.msra.mxu0 %v911_v62 }
 0x258   :  { %3192 = vmatpush3.msra.mxu1 %v912_v61  ;;  %3216 = vmatprep.subr.mxu0 %v3827_v1  ;;  %v1158_v61 = vld [vmem:[#allocation2 + $0x240] sm:$0xff] }
 0x259   :  { %3193 = vmatprep.subr.mxu1 %v3827_v1 }
 0x25a   :  { %3194 = vmatpush3.msra.mxu1 %v911_v62 }
 0x25b   :  { %3269 = vmatprep.subr.mxu1 %v3827_v1 }
 0x2eb   :  { %v762_v0 = vpop.f32.mrf.mxu0 }
 0x2ec   :  { %v763_v2 = vadd.f32 %v4221_v63, %v762_v0 }
 0x2ed   :  { %v3038_v3 = vpop.f32.mrf.mxu0 }
 0x2ee   :  { %v796_v4 = vmax.f32 %v763_v2, 0.0  ;;  %v1157_v2 = vld [vmem:[#allocation2 + $0x238] sm:$0xff] }
 0x2ef   :  { %v767_v6 = vpop.f32.mrf.mxu0  ;;  %v869_v7 = vpop.f32.mrf.mxu1 }
 0x2f0   :  { %v768_v8 = vadd.f32 %v4221_v63, %v767_v6  ;;  %v870_v9 = vadd.f32 %v4221_v63, %v869_v7  ;;  %3143 = vmatmul.mubr.f32.vlgmr.msra.gmra.mxu0 %v796_v4  ;;  %v1156_v4 = vld [vmem:[#allocation2 + $0x230] sm:$0xff]  ;;  %v1153_v6 = vld [vmem:[#allocation2 + $0x218] sm:$0xff] }
 0x2f1   :  { %v3041_v11 = vpop.f32.mrf.mxu0  ;;  %v3091_v12 = vpop.f32.mrf.mxu1  ;;  %3145 = vmatprep.mubr.msk.f32.mxu0 %vm3828_vm0, %v3827_v1  ;;  %3217 = vmatpush3.msra.mxu0 %v1165_v5  ;;  %v1152_v7 = vld [vmem:[#allocation2 + $0x210] sm:$0xff] }
 0x2f2   :  { %v797_v13 = vmax.f32 %v768_v8, 0.0  ;;  %v903_v14 = vmax.f32 %v870_v9, 0.0  ;;  %3218 = vmatprep.subr.mxu0 %v3827_v1  ;;  %v1151_v8 = vld [vmem:[#allocation2 + $0x208] sm:$0xff]  ;;  %v1150_v9 = vld [vmem:[#allocation2 + $0x200] sm:$0xff] }
 0x2f3   :  { %v772_v15 = vpop.f32.mrf.mxu0  ;;  %v874_v16 = vpop.f32.mrf.mxu1  ;;  %3219 = vmatpush3.msra.mxu0 %v1164_v10 }
 0x2f4   :  { %v773_v17 = vadd.f32 %v4221_v63, %v772_v15  ;;  %v875_v18 = vadd.f32 %v4221_v63, %v874_v16  ;;  %3146 = vmatmul.mubr.f32.gmra.mxu0 %v797_v13  ;;  %3196 = vmatmul.mubr.f32.vlgmr.msra.gmra.mxu1 %v903_v14  ;;  %v1404_v15 = vld [vmem:[#allocation2 + $0x2f8] sm:$0xff] }
 0x2f5   :  { %v3044_v20 = vpop.f32.mrf.mxu0  ;;  %v3094_v21 = vpop.f32.mrf.mxu1  ;;  %3148 = vmatprep.mubr.msk.f32.mxu0 %vm3828_vm0, %v3827_v1  ;;  %3198 = vmatprep.mubr.msk.f32.mxu1 %vm3828_vm0, %v3827_v1 }
 0x2f6   :  { %v798_v22 = vmax.f32 %v773_v17, 0.0  ;;  %v904_v23 = vmax.f32 %v875_v18, 0.0  ;;  %3220 = vmatprep.subr.mxu0 %v3827_v1  ;;  %3270 = vmatpush3.msra.mxu1 %v1165_v5  ;;  %v1154_v5 = vld [vmem:[#allocation2 + $0x220] sm:$0xff]  ;;  %v1403_v20 = vld [vmem:[#allocation2 + $0x2f0] sm:$0xff] }
 0x2f7   :  { %v777_v24 = vpop.f32.mrf.mxu0  ;;  %v879_v25 = vpop.f32.mrf.mxu1  ;;  %3221 = vmatpush3.msra.mxu0 %v1163_v19  ;;  %3271 = vmatprep.subr.mxu1 %v3827_v1 }
 0x2f8   :  { %v778_v26 = vadd.f32 %v4221_v63, %v777_v24  ;;  %v880_v27 = vadd.f32 %v4221_v63, %v879_v25  ;;  %3149 = vmatmul.mubr.f32.gmra.mxu0 %v798_v22  ;;  %3199 = vmatmul.mubr.f32.gmra.mxu1 %v904_v23 }
 0x2f9   :  { %v3047_v29 = vpop.f32.mrf.mxu0  ;;  %v3097_v30 = vpop.f32.mrf.mxu1  ;;  %3151 = vmatprep.mubr.msk.f32.mxu0 %vm3828_vm0, %v3827_v1  ;;  %3201 = vmatprep.mubr.msk.f32.mxu1 %vm3828_vm0, %v3827_v1 }
 0x2fa   :  { %v799_v31 = vmax.f32 %v778_v26, 0.0  ;;  %v905_v32 = vmax.f32 %v880_v27, 0.0  ;;  %3222 = vmatprep.subr.mxu0 %v3827_v1  ;;  %3272 = vmatpush3.msra.mxu1 %v1164_v10  ;;  %v4300_v10 = vld [vmem:[%s4667_s4 + $0x3] ss:$0 sm:$0xff]  ;;  %v1402_v29 = vld [vmem:[#allocation2 + $0x2e8] sm:$0xff] }
 0x2fb   :  { %v782_v33 = vpop.f32.mrf.mxu0  ;;  %v884_v35 = vpop.f32.mrf.mxu1  ;;  %3223 = vmatpush3.msra.mxu0 %v1162_v28  ;;  %3273 = vmatprep.subr.mxu1 %v3827_v1 }
 0x2fc   :  { %v783_v36 = vadd.f32 %v4221_v63, %v782_v33  ;;  %v885_v34 = vadd.f32 %v4221_v63, %v884_v35  ;;  %3152 = vmatmul.mubr.f32.gmra.mxu0 %v799_v31  ;;  %3202 = vmatmul.mubr.f32.gmra.mxu1 %v905_v32 }
 0x2fd   :  { %v3050_v38 = vpop.f32.mrf.mxu0  ;;  %v3100_v39 = vpop.f32.mrf.mxu1  ;;  %3154 = vmatprep.mubr.msk.f32.mxu0 %vm3828_vm0, %v3827_v1  ;;  %3204 = vmatprep.mubr.msk.f32.mxu1 %vm3828_vm0, %v3827_v1 }
 0x2fe   :  { %v800_v40 = vmax.f32 %v783_v36, 0.0  ;;  %v906_v41 = vmax.f32 %v885_v34, 0.0  ;;  %3224 = vmatprep.subr.mxu0 %v3827_v1  ;;  %3274 = vmatpush3.msra.mxu1 %v1163_v19  ;;  %v1401_v38 = vld [vmem:[#allocation2 + $0x2e0] sm:$0xff] }
 0x2ff   :  { %v787_v42 = vpop.f32.mrf.mxu0  ;;  %v889_v44 = vpop.f32.mrf.mxu1  ;;  %3225 = vmatpush3.msra.mxu0 %v1161_v37  ;;  %3275 = vmatprep.subr.mxu1 %v3827_v1 }
 0x300   :  { %v788_v45 = vadd.f32 %v4221_v63, %v787_v42  ;;  %v890_v46 = vadd.f32 %v4221_v63, %v889_v44  ;;  %3155 = vmatmul.mubr.f32.gmra.mxu0 %v800_v40  ;;  %3205 = vmatmul.mubr.f32.gmra.mxu1 %v906_v41 }
 0x301   :  { %v3053_v43 = vpop.f32.mrf.mxu0  ;;  %v3103_v48 = vpop.f32.mrf.mxu1  ;;  %3157 = vmatprep.mubr.msk.f32.mxu0 %vm3828_vm0, %v3827_v1  ;;  %3207 = vmatprep.mubr.msk.f32.mxu1 %vm3828_vm0, %v3827_v1 }
 0x302   :  { %v801_v49 = vmax.f32 %v788_v45, 0.0  ;;  %v907_v50 = vmax.f32 %v890_v46, 0.0  ;;  %3226 = vmatprep.subr.mxu0 %v3827_v1  ;;  %3276 = vmatpush3.msra.mxu1 %v1162_v28  ;;  %v1400_v43 = vld [vmem:[#allocation2 + $0x2d8] sm:$0xff] }
 0x303   :  { %v792_v51 = vpop.f32.mrf.mxu0  ;;  %v894_v52 = vpop.f32.mrf.mxu1  ;;  %3227 = vmatpush3.msra.mxu0 %v1160_v47  ;;  %3277 = vmatprep.subr.mxu1 %v3827_v1 }
 0x304   :  { %v793_v54 = vadd.f32 %v4221_v63, %v792_v51  ;;  %v895_v55 = vadd.f32 %v4221_v63, %v894_v52  ;;  %3158 = vmatmul.mubr.f32.gmra.mxu0 %v801_v49  ;;  %3208 = vmatmul.mubr.f32.gmra.mxu1 %v907_v50 }
 0x305   :  { %v3056_v57 = vpop.f32.mrf.mxu0  ;;  %v3106_v53 = vpop.f32.mrf.mxu1  ;;  %3160 = vmatprep.mubr.msk.f32.mxu0 %vm3828_vm0, %v3827_v1  ;;  %3210 = vmatprep.mubr.msk.f32.mxu1 %vm3828_vm0, %v3827_v1 }
 0x306   :  { %v802_v58 = vmax.f32 %v793_v54, 0.0  ;;  %v908_v59 = vmax.f32 %v895_v55, 0.0  ;;  %3228 = vmatprep.subr.mxu0 %v3827_v1  ;;  %3278 = vmatpush3.msra.mxu1 %v1161_v37  ;;  %v1399_v57 = vld [vmem:[#allocation2 + $0x2d0] sm:$0xff] }
 0x307   :  { %v899_v60 = vpop.f32.mrf.mxu1  ;;  %3229 = vmatpush3.msra.mxu0 %v1159_v56  ;;  %3279 = vmatprep.subr.mxu1 %v3827_v1 }
 0x308   :  { %v900_v62 = vadd.f32 %v4221_v63, %v899_v60  ;;  %3161 = vmatmul.mubr.f32.gmra.mxu0 %v802_v58  ;;  %3211 = vmatmul.mubr.f32.gmra.mxu1 %v908_v59  ;;  %v1155_v63 = vld [vmem:[#allocation2 + $0x228] sm:$0xff] }
 0x309   :  { %v3109_v0 = vpop.f32.mrf.mxu1  ;;  %3213 = vmatprep.mubr.msk.f32.mxu1 %vm3828_vm0, %v3827_v1  ;;  %3230 = vmatprep.subr.mxu0 %v3827_v1 }
 0x30a   :  { %v909_v3 = vmax.f32 %v900_v62, 0.0  ;;  %3231 = vmatpush3.msra.mxu0 %v1158_v61  ;;  %3280 = vmatpush3.msra.mxu1 %v1160_v47 }
 0x30b   :  { %3232 = vmatprep.subr.mxu0 %v3827_v1  ;;  %3281 = vmatprep.subr.mxu1 %v3827_v1 }
 0x30c   :  { %3214 = vmatmul.mubr.f32.gmra.mxu1 %v909_v3  ;;  %3233 = vmatpush3.msra.mxu0 %v1157_v2  ;;  %v1398_v3 = vld [vmem:[#allocation2 + $0x2c8] sm:$0xff] }
 0x30d   :  { %3282 = vmatpush3.msra.mxu1 %v1159_v56  ;;  %3234 = vmatprep.subr.mxu0 %v3827_v1 }
 0x30e   :  { %3283 = vmatprep.subr.mxu1 %v3827_v1  ;;  %3235 = vmatpush3.msra.mxu0 %v1156_v4 }
 0x30f   :  { %3284 = vmatpush3.msra.mxu1 %v1158_v61  ;;  %3236 = vmatprep.subr.mxu0 %v3827_v1 }
 0x310   :  { %3285 = vmatprep.subr.mxu1 %v3827_v1  ;;  %3237 = vmatpush3.msra.mxu0 %v1155_v63 }
 0x311   :  { %3286 = vmatpush3.msra.mxu1 %v1157_v2  ;;  %3238 = vmatprep.subr.mxu0 %v3827_v1 }
 0x312   :  { %3287 = vmatprep.subr.mxu1 %v3827_v1  ;;  %3239 = vmatpush3.msra.mxu0 %v1154_v5 }
 0x313   :  { %3288 = vmatpush3.msra.mxu1 %v1156_v4  ;;  %3240 = vmatprep.subr.mxu0 %v3827_v1 }
 0x314   :  { %3289 = vmatprep.subr.mxu1 %v3827_v1  ;;  %3241 = vmatpush3.msra.mxu0 %v1153_v6 }
 0x315   :  { %3290 = vmatpush3.msra.mxu1 %v1155_v63  ;;  %3242 = vmatprep.subr.mxu0 %v3827_v1 }
 0x316   :  { %3291 = vmatprep.subr.mxu1 %v3827_v1  ;;  %3248 = vmatprep.mubr.msk.f32.mxu0 %vm3828_vm0, %v3827_v1 }
 0x317   :  { %3292 = vmatpush3.msra.mxu1 %v1154_v5  ;;  %3301 = vmatprep.mubr.msk.f32.mxu1 %vm3828_vm0, %v3827_v1 }
 0x318   :  { %3293 = vmatprep.subr.mxu1 %v3827_v1  ;;  %3243 = vmatpush3.msra.mxu0 %v1152_v7 }
 0x319   :  { %3294 = vmatpush3.msra.mxu1 %v1153_v6  ;;  %3244 = vmatprep.subr.mxu0 %v3827_v1 }
 0x31a   :  { %3295 = vmatprep.subr.mxu1 %v3827_v1  ;;  %3245 = vmatpush3.msra.mxu0 %v1151_v8 }
 0x31b   :  { %3296 = vmatpush3.msra.mxu1 %v1152_v7  ;;  %3246 = vmatprep.subr.mxu0 %v3827_v1 }
 0x31c   :  { %3297 = vmatprep.subr.mxu1 %v3827_v1  ;;  %3247 = vmatpush3.msra.mxu0 %v1150_v9 }
 0x31d   :  { %3298 = vmatpush3.msra.mxu1 %v1151_v8  ;;  %3322 = vmatprep.subr.mxu0 %v3827_v1  ;;  %v1397_v8 = vld [vmem:[#allocation2 + $0x2c0] sm:$0xff] }
 0x31e   :  { %3299 = vmatprep.subr.mxu1 %v3827_v1 }
 0x31f   :  { %3300 = vmatpush3.msra.mxu1 %v1150_v9 }
 0x320   :  { %3375 = vmatprep.subr.mxu1 %v3827_v1 }
 0x3b0   :  { %v1001_v11 = vpop.f32.mrf.mxu0 }
 0x3b1   :  { %v1002_v12 = vadd.f32 %v4300_v10, %v1001_v11 }
 0x3b2   :  { %v3144_v13 = vpop.f32.mrf.mxu0 }
 0x3b3   :  { %v1035_v14 = vmax.f32 %v1002_v12, 0.0  ;;  %v1396_v12 = vld [vmem:[#allocation2 + $0x2b8] sm:$0xff] }
 0x3b4   :  { %v1006_v16 = vpop.f32.mrf.mxu0  ;;  %v1108_v17 = vpop.f32.mrf.mxu1 }
 0x3b5   :  { %v1007_v18 = vadd.f32 %v4300_v10, %v1006_v16  ;;  %v1109_v19 = vadd.f32 %v4300_v10, %v1108_v17  ;;  %3249 = vmatmul.mubr.f32.vlgmr.msra.gmra.mxu0 %v1035_v14  ;;  %v1395_v14 = vld [vmem:[#allocation2 + $0x2b0] sm:$0xff]  ;;  %v1392_v16 = vld [vmem:[#allocation2 + $0x298] sm:$0xff] }
 0x3b6   :  { %v3147_v21 = vpop.f32.mrf.mxu0  ;;  %v3197_v22 = vpop.f32.mrf.mxu1  ;;  %3251 = vmatprep.mubr.msk.f32.mxu0 %vm3828_vm0, %v3827_v1  ;;  %3323 = vmatpush3.msra.mxu0 %v1404_v15  ;;  %v1391_v17 = vld [vmem:[#allocation2 + $0x290] sm:$0xff] }
 0x3b7   :  { %v1036_v23 = vmax.f32 %v1007_v18, 0.0  ;;  %v1142_v24 = vmax.f32 %v1109_v19, 0.0  ;;  %3324 = vmatprep.subr.mxu0 %v3827_v1  ;;  %v1390_v18 = vld [vmem:[#allocation2 + $0x288] sm:$0xff]  ;;  %v1389_v19 = vld [vmem:[#allocation2 + $0x280] sm:$0xff] }
 0x3b8   :  { %v1011_v25 = vpop.f32.mrf.mxu0  ;;  %v1113_v26 = vpop.f32.mrf.mxu1  ;;  %3325 = vmatpush3.msra.mxu0 %v1403_v20 }
 0x3b9   :  { %v1012_v27 = vadd.f32 %v4300_v10, %v1011_v25  ;;  %v1114_v28 = vadd.f32 %v4300_v10, %v1113_v26  ;;  %3252 = vmatmul.mubr.f32.gmra.mxu0 %v1036_v23  ;;  %3302 = vmatmul.mubr.f32.vlgmr.msra.gmra.mxu1 %v1142_v24  ;;  %v1643_v25 = vld [vmem:[#allocation2 + $0x378] sm:$0xff] }
 0x3ba   :  { %v3150_v30 = vpop.f32.mrf.mxu0  ;;  %v3200_v31 = vpop.f32.mrf.mxu1  ;;  %3254 = vmatprep.mubr.msk.f32.mxu0 %vm3828_vm0, %v3827_v1  ;;  %3304 = vmatprep.mubr.msk.f32.mxu1 %vm3828_vm0, %v3827_v1 }
 0x3bb   :  { %v1037_v32 = vmax.f32 %v1012_v27, 0.0  ;;  %v1143_v33 = vmax.f32 %v1114_v28, 0.0  ;;  %3326 = vmatprep.subr.mxu0 %v3827_v1  ;;  %3376 = vmatpush3.msra.mxu1 %v1404_v15  ;;  %v1393_v15 = vld [vmem:[#allocation2 + $0x2a0] sm:$0xff]  ;;  %v1642_v30 = vld [vmem:[#allocation2 + $0x370] sm:$0xff] }
 0x3bc   :  { %v1016_v35 = vpop.f32.mrf.mxu0  ;;  %v1118_v36 = vpop.f32.mrf.mxu1  ;;  %3327 = vmatpush3.msra.mxu0 %v1402_v29  ;;  %3377 = vmatprep.subr.mxu1 %v3827_v1 }
 0x3bd   :  { %v1017_v34 = vadd.f32 %v4300_v10, %v1016_v35  ;;  %v1119_v37 = vadd.f32 %v4300_v10, %v1118_v36  ;;  %3255 = vmatmul.mubr.f32.gmra.mxu0 %v1037_v32  ;;  %3305 = vmatmul.mubr.f32.gmra.mxu1 %v1143_v33 }
 0x3be   :  { %v3153_v39 = vpop.f32.mrf.mxu0  ;;  %v3203_v40 = vpop.f32.mrf.mxu1  ;;  %3257 = vmatprep.mubr.msk.f32.mxu0 %vm3828_vm0, %v3827_v1  ;;  %3307 = vmatprep.mubr.msk.f32.mxu1 %vm3828_vm0, %v3827_v1 }
 0x3bf   :  { %v1038_v41 = vmax.f32 %v1017_v34, 0.0  ;;  %v1144_v42 = vmax.f32 %v1119_v37, 0.0  ;;  %3328 = vmatprep.subr.mxu0 %v3827_v1  ;;  %3378 = vmatpush3.msra.mxu1 %v1403_v20  ;;  %v4379_v20 = vld [vmem:[%s4667_s4 + $0x4] ss:$0 sm:$0xff]  ;;  %v1641_v39 = vld [vmem:[#allocation2 + $0x368] sm:$0xff] }
 0x3c0   :  { %v1021_v44 = vpop.f32.mrf.mxu0  ;;  %v1123_v45 = vpop.f32.mrf.mxu1  ;;  %3329 = vmatpush3.msra.mxu0 %v1401_v38  ;;  %3379 = vmatprep.subr.mxu1 %v3827_v1 }
 0x3c1   :  { %v1022_v46 = vadd.f32 %v4300_v10, %v1021_v44  ;;  %v1124_v47 = vadd.f32 %v4300_v10, %v1123_v45  ;;  %3258 = vmatmul.mubr.f32.gmra.mxu0 %v1038_v41  ;;  %3308 = vmatmul.mubr.f32.gmra.mxu1 %v1144_v42 }
 0x3c2   :  { %v3156_v48 = vpop.f32.mrf.mxu0  ;;  %v3206_v49 = vpop.f32.mrf.mxu1  ;;  %3260 = vmatprep.mubr.msk.f32.mxu0 %vm3828_vm0, %v3827_v1  ;;  %3310 = vmatprep.mubr.msk.f32.mxu1 %vm3828_vm0, %v3827_v1 }
 0x3c3   :  { %v1039_v50 = vmax.f32 %v1022_v46, 0.0  ;;  %v1145_v51 = vmax.f32 %v1124_v47, 0.0  ;;  %3330 = vmatprep.subr.mxu0 %v3827_v1  ;;  %3380 = vmatpush3.msra.mxu1 %v1402_v29  ;;  %v1640_v48 = vld [vmem:[#allocation2 + $0x360] sm:$0xff] }
 0x3c4   :  { %v1026_v52 = vpop.f32.mrf.mxu0  ;;  %v1128_v54 = vpop.f32.mrf.mxu1  ;;  %3331 = vmatpush3.msra.mxu0 %v1400_v43  ;;  %3381 = vmatprep.subr.mxu1 %v3827_v1 }
 0x3c5   :  { %v1027_v55 = vadd.f32 %v4300_v10, %v1026_v52  ;;  %v1129_v56 = vadd.f32 %v4300_v10, %v1128_v54  ;;  %3261 = vmatmul.mubr.f32.gmra.mxu0 %v1039_v50  ;;  %3311 = vmatmul.mubr.f32.gmra.mxu1 %v1145_v51 }
 0x3c6   :  { %v3159_v53 = vpop.f32.mrf.mxu0  ;;  %v3209_v58 = vpop.f32.mrf.mxu1  ;;  %3263 = vmatprep.mubr.msk.f32.mxu0 %vm3828_vm0, %v3827_v1  ;;  %3313 = vmatprep.mubr.msk.f32.mxu1 %vm3828_vm0, %v3827_v1 }
 0x3c7   :  { %v1040_v59 = vmax.f32 %v1027_v55, 0.0  ;;  %v1146_v60 = vmax.f32 %v1129_v56, 0.0  ;;  %3332 = vmatprep.subr.mxu0 %v3827_v1  ;;  %3382 = vmatpush3.msra.mxu1 %v1401_v38  ;;  %v1639_v53 = vld [vmem:[#allocation2 + $0x358] sm:$0xff] }
 0x3c8   :  { %v1031_v61 = vpop.f32.mrf.mxu0  ;;  %v1133_v62 = vpop.f32.mrf.mxu1  ;;  %3333 = vmatpush3.msra.mxu0 %v1399_v57  ;;  %3383 = vmatprep.subr.mxu1 %v3827_v1 }
 0x3c9   :  { %v1032_v0 = vadd.f32 %v4300_v10, %v1031_v61  ;;  %v1134_v2 = vadd.f32 %v4300_v10, %v1133_v62  ;;  %3264 = vmatmul.mubr.f32.gmra.mxu0 %v1040_v59  ;;  %3314 = vmatmul.mubr.f32.gmra.mxu1 %v1146_v60 }
 0x3ca   :  { %v3162_v4 = vpop.f32.mrf.mxu0  ;;  %v3212_v63 = vpop.f32.mrf.mxu1  ;;  %3266 = vmatprep.mubr.msk.f32.mxu0 %vm3828_vm0, %v3827_v1  ;;  %3316 = vmatprep.mubr.msk.f32.mxu1 %vm3828_vm0, %v3827_v1 }
 0x3cb   :  { %v1041_v5 = vmax.f32 %v1032_v0, 0.0  ;;  %v1147_v6 = vmax.f32 %v1134_v2, 0.0  ;;  %3334 = vmatprep.subr.mxu0 %v3827_v1  ;;  %3384 = vmatpush3.msra.mxu1 %v1400_v43  ;;  %v1638_v4 = vld [vmem:[#allocation2 + $0x350] sm:$0xff] }
 0x3cc   :  { %v1138_v7 = vpop.f32.mrf.mxu1  ;;  %3335 = vmatpush3.msra.mxu0 %v1398_v3  ;;  %3385 = vmatprep.subr.mxu1 %v3827_v1 }
 0x3cd   :  { %v1139_v9 = vadd.f32 %v4300_v10, %v1138_v7  ;;  %3267 = vmatmul.mubr.f32.gmra.mxu0 %v1041_v5  ;;  %3317 = vmatmul.mubr.f32.gmra.mxu1 %v1147_v6  ;;  %v1394_v10 = vld [vmem:[#allocation2 + $0x2a8] sm:$0xff] }
 0x3ce   :  { %v3215_v11 = vpop.f32.mrf.mxu1  ;;  %3319 = vmatprep.mubr.msk.f32.mxu1 %vm3828_vm0, %v3827_v1  ;;  %3336 = vmatprep.subr.mxu0 %v3827_v1 }
 0x3cf   :  { %v1148_v13 = vmax.f32 %v1139_v9, 0.0  ;;  %3337 = vmatpush3.msra.mxu0 %v1397_v8  ;;  %3386 = vmatpush3.msra.mxu1 %v1399_v57 }
 0x3d0   :  { %3338 = vmatprep.subr.mxu0 %v3827_v1  ;;  %3387 = vmatprep.subr.mxu1 %v3827_v1 }
 0x3d1   :  { %3320 = vmatmul.mubr.f32.gmra.mxu1 %v1148_v13  ;;  %3339 = vmatpush3.msra.mxu0 %v1396_v12  ;;  %v1637_v13 = vld [vmem:[#allocation2 + $0x348] sm:$0xff] }
 0x3d2   :  { %3388 = vmatpush3.msra.mxu1 %v1398_v3  ;;  %3340 = vmatprep.subr.mxu0 %v3827_v1 }
 0x3d3   :  { %3389 = vmatprep.subr.mxu1 %v3827_v1  ;;  %3341 = vmatpush3.msra.mxu0 %v1395_v14 }
 0x3d4   :  { %3390 = vmatpush3.msra.mxu1 %v1397_v8  ;;  %3342 = vmatprep.subr.mxu0 %v3827_v1 }
 0x3d5   :  { %3391 = vmatprep.subr.mxu1 %v3827_v1  ;;  %3343 = vmatpush3.msra.mxu0 %v1394_v10 }
 0x3d6   :  { %3392 = vmatpush3.msra.mxu1 %v1396_v12  ;;  %3344 = vmatprep.subr.mxu0 %v3827_v1 }
 0x3d7   :  { %3393 = vmatprep.subr.mxu1 %v3827_v1  ;;  %3345 = vmatpush3.msra.mxu0 %v1393_v15 }
 0x3d8   :  { %3394 = vmatpush3.msra.mxu1 %v1395_v14  ;;  %3346 = vmatprep.subr.mxu0 %v3827_v1 }
 0x3d9   :  { %3395 = vmatprep.subr.mxu1 %v3827_v1  ;;  %3347 = vmatpush3.msra.mxu0 %v1392_v16 }
 0x3da   :  { %3396 = vmatpush3.msra.mxu1 %v1394_v10  ;;  %3348 = vmatprep.subr.mxu0 %v3827_v1 }
 0x3db   :  { %3397 = vmatprep.subr.mxu1 %v3827_v1  ;;  %3354 = vmatprep.mubr.msk.f32.mxu0 %vm3828_vm0, %v3827_v1 }
 0x3dc   :  { %3398 = vmatpush3.msra.mxu1 %v1393_v15  ;;  %3407 = vmatprep.mubr.msk.f32.mxu1 %vm3828_vm0, %v3827_v1 }
 0x3dd   :  { %3399 = vmatprep.subr.mxu1 %v3827_v1  ;;  %3349 = vmatpush3.msra.mxu0 %v1391_v17 }
 0x3de   :  { %3400 = vmatpush3.msra.mxu1 %v1392_v16  ;;  %3350 = vmatprep.subr.mxu0 %v3827_v1 }
 0x3df   :  { %3401 = vmatprep.subr.mxu1 %v3827_v1  ;;  %3351 = vmatpush3.msra.mxu0 %v1390_v18 }
 0x3e0   :  { %3402 = vmatpush3.msra.mxu1 %v1391_v17  ;;  %3352 = vmatprep.subr.mxu0 %v3827_v1 }
 0x3e1   :  { %3403 = vmatprep.subr.mxu1 %v3827_v1  ;;  %3353 = vmatpush3.msra.mxu0 %v1389_v19 }
 0x3e2   :  { %3404 = vmatpush3.msra.mxu1 %v1390_v18  ;;  %3428 = vmatprep.subr.mxu0 %v3827_v1  ;;  %v1636_v18 = vld [vmem:[#allocation2 + $0x340] sm:$0xff] }
 0x3e3   :  { %3405 = vmatprep.subr.mxu1 %v3827_v1 }
 0x3e4   :  { %3406 = vmatpush3.msra.mxu1 %v1389_v19 }
 0x3e5   :  { %3481 = vmatprep.subr.mxu1 %v3827_v1 }
 0x475   :  { %v1240_v21 = vpop.f32.mrf.mxu0 }
 0x476   :  { %v1241_v22 = vadd.f32 %v4379_v20, %v1240_v21 }
 0x477   :  { %v3250_v23 = vpop.f32.mrf.mxu0 }
 0x478   :  { %v1274_v24 = vmax.f32 %v1241_v22, 0.0  ;;  %v1635_v22 = vld [vmem:[#allocation2 + $0x338] sm:$0xff] }
 0x479   :  { %v1245_v26 = vpop.f32.mrf.mxu0  ;;  %v1347_v27 = vpop.f32.mrf.mxu1 }
 0x47a   :  { %v1246_v28 = vadd.f32 %v4379_v20, %v1245_v26  ;;  %v1348_v29 = vadd.f32 %v4379_v20, %v1347_v27  ;;  %3355 = vmatmul.mubr.f32.vlgmr.msra.gmra.mxu0 %v1274_v24  ;;  %v1634_v24 = vld [vmem:[#allocation2 + $0x330] sm:$0xff]  ;;  %v1631_v26 = vld [vmem:[#allocation2 + $0x318] sm:$0xff] }
 0x47b   :  { %v3253_v31 = vpop.f32.mrf.mxu0  ;;  %v3303_v32 = vpop.f32.mrf.mxu1  ;;  %3357 = vmatprep.mubr.msk.f32.mxu0 %vm3828_vm0, %v3827_v1  ;;  %3429 = vmatpush3.msra.mxu0 %v1643_v25  ;;  %v1630_v27 = vld [vmem:[#allocation2 + $0x310] sm:$0xff] }
 0x47c   :  { %v1275_v33 = vmax.f32 %v1246_v28, 0.0  ;;  %v1381_v35 = vmax.f32 %v1348_v29, 0.0  ;;  %3430 = vmatprep.subr.mxu0 %v3827_v1  ;;  %v1629_v28 = vld [vmem:[#allocation2 + $0x308] sm:$0xff]  ;;  %v1628_v29 = vld [vmem:[#allocation2 + $0x300] sm:$0xff] }
 0x47d   :  { %v1250_v36 = vpop.f32.mrf.mxu0  ;;  %v1352_v34 = vpop.f32.mrf.mxu1  ;;  %3431 = vmatpush3.msra.mxu0 %v1642_v30 }
 0x47e   :  { %v1251_v37 = vadd.f32 %v4379_v20, %v1250_v36  ;;  %v1353_v38 = vadd.f32 %v4379_v20, %v1352_v34  ;;  %3358 = vmatmul.mubr.f32.gmra.mxu0 %v1275_v33  ;;  %3408 = vmatmul.mubr.f32.vlgmr.msra.gmra.mxu1 %v1381_v35  ;;  %v1882_v36 = vld [vmem:[#allocation2 + $0x3f8] sm:$0xff] }
 0x47f   :  { %v3256_v40 = vpop.f32.mrf.mxu0  ;;  %v3306_v41 = vpop.f32.mrf.mxu1  ;;  %3360 = vmatprep.mubr.msk.f32.mxu0 %vm3828_vm0, %v3827_v1  ;;  %3410 = vmatprep.mubr.msk.f32.mxu1 %vm3828_vm0, %v3827_v1 }
 0x480   :  { %v1276_v42 = vmax.f32 %v1251_v37, 0.0  ;;  %v1382_v44 = vmax.f32 %v1353_v38, 0.0  ;;  %3432 = vmatprep.subr.mxu0 %v3827_v1  ;;  %3482 = vmatpush3.msra.mxu1 %v1643_v25  ;;  %v1632_v25 = vld [vmem:[#allocation2 + $0x320] sm:$0xff]  ;;  %v1881_v40 = vld [vmem:[#allocation2 + $0x3f0] sm:$0xff] }
 0x481   :  { %v1255_v45 = vpop.f32.mrf.mxu0  ;;  %v1357_v46 = vpop.f32.mrf.mxu1  ;;  %3433 = vmatpush3.msra.mxu0 %v1641_v39  ;;  %3483 = vmatprep.subr.mxu1 %v3827_v1 }
 0x482   :  { %v1256_v47 = vadd.f32 %v4379_v20, %v1255_v45  ;;  %v1358_v43 = vadd.f32 %v4379_v20, %v1357_v46  ;;  %3361 = vmatmul.mubr.f32.gmra.mxu0 %v1276_v42  ;;  %3411 = vmatmul.mubr.f32.gmra.mxu1 %v1382_v44 }
 0x483   :  { %v3259_v49 = vpop.f32.mrf.mxu0  ;;  %v3309_v50 = vpop.f32.mrf.mxu1  ;;  %3363 = vmatprep.mubr.msk.f32.mxu0 %vm3828_vm0, %v3827_v1  ;;  %3413 = vmatprep.mubr.msk.f32.mxu1 %vm3828_vm0, %v3827_v1 }
 0x484   :  { %v1277_v51 = vmax.f32 %v1256_v47, 0.0  ;;  %v1383_v52 = vmax.f32 %v1358_v43, 0.0  ;;  %3434 = vmatprep.subr.mxu0 %v3827_v1  ;;  %3484 = vmatpush3.msra.mxu1 %v1642_v30  ;;  %v4458_v30 = vld [vmem:[%s4667_s4 + $0x5] ss:$0 sm:$0xff]  ;;  %v1880_v49 = vld [vmem:[#allocation2 + $0x3e8] sm:$0xff] }
 0x485   :  { %v1260_v54 = vpop.f32.mrf.mxu0  ;;  %v1362_v55 = vpop.f32.mrf.mxu1  ;;  %3435 = vmatpush3.msra.mxu0 %v1640_v48  ;;  %3485 = vmatprep.subr.mxu1 %v3827_v1 }
 0x486   :  { %v1261_v56 = vadd.f32 %v4379_v20, %v1260_v54  ;;  %v1363_v57 = vadd.f32 %v4379_v20, %v1362_v55  ;;  %3364 = vmatmul.mubr.f32.gmra.mxu0 %v1277_v51  ;;  %3414 = vmatmul.mubr.f32.gmra.mxu1 %v1383_v52 }
 0x487   :  { %v3262_v58 = vpop.f32.mrf.mxu0  ;;  %v3312_v59 = vpop.f32.mrf.mxu1  ;;  %3366 = vmatprep.mubr.msk.f32.mxu0 %vm3828_vm0, %v3827_v1  ;;  %3416 = vmatprep.mubr.msk.f32.mxu1 %vm3828_vm0, %v3827_v1 }
 0x488   :  { %v1278_v60 = vmax.f32 %v1261_v56, 0.0  ;;  %v1384_v61 = vmax.f32 %v1363_v57, 0.0  ;;  %3436 = vmatprep.subr.mxu0 %v3827_v1  ;;  %3486 = vmatpush3.msra.mxu1 %v1641_v39  ;;  %v1879_v58 = vld [vmem:[#allocation2 + $0x3e0] sm:$0xff] }
 0x489   :  { %v1265_v62 = vpop.f32.mrf.mxu0  ;;  %v1367_v0 = vpop.f32.mrf.mxu1  ;;  %3437 = vmatpush3.msra.mxu0 %v1639_v53  ;;  %3487 = vmatprep.subr.mxu1 %v3827_v1 }
 0x48a   :  { %v1266_v2 = vadd.f32 %v4379_v20, %v1265_v62  ;;  %v1368_v3 = vadd.f32 %v4379_v20, %v1367_v0  ;;  %3367 = vmatmul.mubr.f32.gmra.mxu0 %v1278_v60  ;;  %3417 = vmatmul.mubr.f32.gmra.mxu1 %v1384_v61 }
 0x48b   :  { %v3265_v63 = vpop.f32.mrf.mxu0  ;;  %v3315_v5 = vpop.f32.mrf.mxu1  ;;  %3369 = vmatprep.mubr.msk.f32.mxu0 %vm3828_vm0, %v3827_v1  ;;  %3419 = vmatprep.mubr.msk.f32.mxu1 %vm3828_vm0, %v3827_v1 }
 0x48c   :  { %v1279_v6 = vmax.f32 %v1266_v2, 0.0  ;;  %v1385_v7 = vmax.f32 %v1368_v3, 0.0  ;;  %3438 = vmatprep.subr.mxu0 %v3827_v1  ;;  %3488 = vmatpush3.msra.mxu1 %v1640_v48  ;;  %v1878_v63 = vld [vmem:[#allocation2 + $0x3d8] sm:$0xff] }
 0x48d   :  { %v1270_v8 = vpop.f32.mrf.mxu0  ;;  %v1372_v9 = vpop.f32.mrf.mxu1  ;;  %3439 = vmatpush3.msra.mxu0 %v1638_v4  ;;  %3489 = vmatprep.subr.mxu1 %v3827_v1 }
 0x48e   :  { %v1271_v11 = vadd.f32 %v4379_v20, %v1270_v8  ;;  %v1373_v12 = vadd.f32 %v4379_v20, %v1372_v9  ;;  %3370 = vmatmul.mubr.f32.gmra.mxu0 %v1279_v6  ;;  %3420 = vmatmul.mubr.f32.gmra.mxu1 %v1385_v7 }
 0x48f   :  { %v3268_v14 = vpop.f32.mrf.mxu0  ;;  %v3318_v10 = vpop.f32.mrf.mxu1  ;;  %3372 = vmatprep.mubr.msk.f32.mxu0 %vm3828_vm0, %v3827_v1  ;;  %3422 = vmatprep.mubr.msk.f32.mxu1 %vm3828_vm0, %v3827_v1 }
 0x490   :  { %v1280_v15 = vmax.f32 %v1271_v11, 0.0  ;;  %v1386_v16 = vmax.f32 %v1373_v12, 0.0  ;;  %3440 = vmatprep.subr.mxu0 %v3827_v1  ;;  %3490 = vmatpush3.msra.mxu1 %v1639_v53  ;;  %v1877_v14 = vld [vmem:[#allocation2 + $0x3d0] sm:$0xff] }
 0x491   :  { %v1377_v17 = vpop.f32.mrf.mxu1  ;;  %3441 = vmatpush3.msra.mxu0 %v1637_v13  ;;  %3491 = vmatprep.subr.mxu1 %v3827_v1 }
 0x492   :  { %v1378_v19 = vadd.f32 %v4379_v20, %v1377_v17  ;;  %3373 = vmatmul.mubr.f32.gmra.mxu0 %v1280_v15  ;;  %3423 = vmatmul.mubr.f32.gmra.mxu1 %v1386_v16  ;;  %v1633_v20 = vld [vmem:[#allocation2 + $0x328] sm:$0xff] }
 0x493   :  { %v3321_v21 = vpop.f32.mrf.mxu1  ;;  %3425 = vmatprep.mubr.msk.f32.mxu1 %vm3828_vm0, %v3827_v1  ;;  %3442 = vmatprep.subr.mxu0 %v3827_v1 }
 0x494   :  { %v1387_v23 = vmax.f32 %v1378_v19, 0.0  ;;  %3443 = vmatpush3.msra.mxu0 %v1636_v18  ;;  %3492 = vmatpush3.msra.mxu1 %v1638_v4 }
 0x495   :  { %3444 = vmatprep.subr.mxu0 %v3827_v1  ;;  %3493 = vmatprep.subr.mxu1 %v3827_v1 }
 0x496   :  { %3426 = vmatmul.mubr.f32.gmra.mxu1 %v1387_v23  ;;  %3445 = vmatpush3.msra.mxu0 %v1635_v22  ;;  %v1876_v23 = vld [vmem:[#allocation2 + $0x3c8] sm:$0xff] }
 0x497   :  { %3494 = vmatpush3.msra.mxu1 %v1637_v13  ;;  %3446 = vmatprep.subr.mxu0 %v3827_v1 }
 0x498   :  { %3495 = vmatprep.subr.mxu1 %v3827_v1  ;;  %3447 = vmatpush3.msra.mxu0 %v1634_v24 }
 0x499   :  { %3496 = vmatpush3.msra.mxu1 %v1636_v18  ;;  %3448 = vmatprep.subr.mxu0 %v3827_v1 }
 0x49a   :  { %3497 = vmatprep.subr.mxu1 %v3827_v1  ;;  %3449 = vmatpush3.msra.mxu0 %v1633_v20 }
 0x49b   :  { %3498 = vmatpush3.msra.mxu1 %v1635_v22  ;;  %3450 = vmatprep.subr.mxu0 %v3827_v1 }
 0x49c   :  { %3499 = vmatprep.subr.mxu1 %v3827_v1  ;;  %3451 = vmatpush3.msra.mxu0 %v1632_v25 }
 0x49d   :  { %3500 = vmatpush3.msra.mxu1 %v1634_v24  ;;  %3452 = vmatprep.subr.mxu0 %v3827_v1 }
 0x49e   :  { %3501 = vmatprep.subr.mxu1 %v3827_v1  ;;  %3453 = vmatpush3.msra.mxu0 %v1631_v26 }
 0x49f   :  { %3502 = vmatpush3.msra.mxu1 %v1633_v20  ;;  %3454 = vmatprep.subr.mxu0 %v3827_v1 }
 0x4a0   :  { %3503 = vmatprep.subr.mxu1 %v3827_v1  ;;  %3460 = vmatprep.mubr.msk.f32.mxu0 %vm3828_vm0, %v3827_v1 }
 0x4a1   :  { %3504 = vmatpush3.msra.mxu1 %v1632_v25  ;;  %3513 = vmatprep.mubr.msk.f32.mxu1 %vm3828_vm0, %v3827_v1 }
 0x4a2   :  { %3505 = vmatprep.subr.mxu1 %v3827_v1  ;;  %3455 = vmatpush3.msra.mxu0 %v1630_v27 }
 0x4a3   :  { %3506 = vmatpush3.msra.mxu1 %v1631_v26  ;;  %3456 = vmatprep.subr.mxu0 %v3827_v1 }
 0x4a4   :  { %3507 = vmatprep.subr.mxu1 %v3827_v1  ;;  %3457 = vmatpush3.msra.mxu0 %v1629_v28 }
 0x4a5   :  { %3508 = vmatpush3.msra.mxu1 %v1630_v27  ;;  %3458 = vmatprep.subr.mxu0 %v3827_v1 }
 0x4a6   :  { %3509 = vmatprep.subr.mxu1 %v3827_v1  ;;  %3459 = vmatpush3.msra.mxu0 %v1628_v29 }
 0x4a7   :  { %3510 = vmatpush3.msra.mxu1 %v1629_v28  ;;  %3534 = vmatprep.subr.mxu0 %v3827_v1  ;;  %v1875_v28 = vld [vmem:[#allocation2 + $0x3c0] sm:$0xff] }
 0x4a8   :  { %3511 = vmatprep.subr.mxu1 %v3827_v1 }
 0x4a9   :  { %3512 = vmatpush3.msra.mxu1 %v1628_v29 }
 0x4aa   :  { %3587 = vmatprep.subr.mxu1 %v3827_v1 }
 0x53a   :  { %v1479_v31 = vpop.f32.mrf.mxu0 }
 0x53b   :  { %v1480_v32 = vadd.f32 %v4458_v30, %v1479_v31 }
 0x53c   :  { %v3356_v33 = vpop.f32.mrf.mxu0 }
 0x53d   :  { %v1513_v35 = vmax.f32 %v1480_v32, 0.0  ;;  %v1874_v32 = vld [vmem:[#allocation2 + $0x3b8] sm:$0xff] }
 0x53e   :  { %v1484_v34 = vpop.f32.mrf.mxu0  ;;  %v1586_v37 = vpop.f32.mrf.mxu1 }
 0x53f   :  { %v1485_v38 = vadd.f32 %v4458_v30, %v1484_v34  ;;  %v1587_v39 = vadd.f32 %v4458_v30, %v1586_v37  ;;  %3461 = vmatmul.mubr.f32.vlgmr.msra.gmra.mxu0 %v1513_v35  ;;  %v1873_v35 = vld [vmem:[#allocation2 + $0x3b0] sm:$0xff]  ;;  %v1870_v34 = vld [vmem:[#allocation2 + $0x398] sm:$0xff] }
 0x540   :  { %v3359_v41 = vpop.f32.mrf.mxu0  ;;  %v3409_v42 = vpop.f32.mrf.mxu1  ;;  %3463 = vmatprep.mubr.msk.f32.mxu0 %vm3828_vm0, %v3827_v1  ;;  %3535 = vmatpush3.msra.mxu0 %v1882_v36  ;;  %v1869_v37 = vld [vmem:[#allocation2 + $0x390] sm:$0xff] }
 0x541   :  { %v1514_v44 = vmax.f32 %v1485_v38, 0.0  ;;  %v1620_v45 = vmax.f32 %v1587_v39, 0.0  ;;  %3536 = vmatprep.subr.mxu0 %v3827_v1  ;;  %v1868_v38 = vld [vmem:[#allocation2 + $0x388] sm:$0xff]  ;;  %v1867_v39 = vld [vmem:[#allocation2 + $0x380] sm:$0xff] }
 0x542   :  { %v1489_v46 = vpop.f32.mrf.mxu0  ;;  %v1591_v47 = vpop.f32.mrf.mxu1  ;;  %3537 = vmatpush3.msra.mxu0 %v1881_v40 }
 0x543   :  { %v1490_v43 = vadd.f32 %v4458_v30, %v1489_v46  ;;  %v1592_v48 = vadd.f32 %v4458_v30, %v1591_v47  ;;  %3464 = vmatmul.mubr.f32.gmra.mxu0 %v1514_v44  ;;  %3514 = vmatmul.mubr.f32.vlgmr.msra.gmra.mxu1 %v1620_v45  ;;  %v2120_v46 = vld [vmem:[#allocation5 + $0x78] sm:$0xff] }
 0x544   :  { %v3362_v50 = vpop.f32.mrf.mxu0  ;;  %v3412_v51 = vpop.f32.mrf.mxu1  ;;  %3466 = vmatprep.mubr.msk.f32.mxu0 %vm3828_vm0, %v3827_v1  ;;  %3516 = vmatprep.mubr.msk.f32.mxu1 %vm3828_vm0, %v3827_v1 }
 0x545   :  { %v1515_v52 = vmax.f32 %v1490_v43, 0.0  ;;  %v1621_v54 = vmax.f32 %v1592_v48, 0.0  ;;  %3538 = vmatprep.subr.mxu0 %v3827_v1  ;;  %3588 = vmatpush3.msra.mxu1 %v1882_v36  ;;  %v1871_v36 = vld [vmem:[#allocation2 + $0x3a0] sm:$0xff]  ;;  %v2119_v50 = vld [vmem:[#allocation5 + $0x70] sm:$0xff] }
 0x546   :  { %v1494_v55 = vpop.f32.mrf.mxu0  ;;  %v1596_v56 = vpop.f32.mrf.mxu1  ;;  %3539 = vmatpush3.msra.mxu0 %v1880_v49  ;;  %3589 = vmatprep.subr.mxu1 %v3827_v1 }
 0x547   :  { %v1495_v57 = vadd.f32 %v4458_v30, %v1494_v55  ;;  %v1597_v53 = vadd.f32 %v4458_v30, %v1596_v56  ;;  %3467 = vmatmul.mubr.f32.gmra.mxu0 %v1515_v52  ;;  %3517 = vmatmul.mubr.f32.gmra.mxu1 %v1621_v54 }
 0x548   :  { %v3365_v59 = vpop.f32.mrf.mxu0  ;;  %v3415_v60 = vpop.f32.mrf.mxu1  ;;  %3469 = vmatprep.mubr.msk.f32.mxu0 %vm3828_vm0, %v3827_v1  ;;  %3519 = vmatprep.mubr.msk.f32.mxu1 %vm3828_vm0, %v3827_v1 }
 0x549   :  { %v1516_v61 = vmax.f32 %v1495_v57, 0.0  ;;  %v1622_v62 = vmax.f32 %v1597_v53, 0.0  ;;  %3540 = vmatprep.subr.mxu0 %v3827_v1  ;;  %3590 = vmatpush3.msra.mxu1 %v1881_v40  ;;  %v4537_v40 = vld [vmem:[%s4667_s4 + $0x6] ss:$0 sm:$0xff]  ;;  %v2118_v59 = vld [vmem:[#allocation5 + $0x68] sm:$0xff] }
 0x54a   :  { %v1499_v0 = vpop.f32.mrf.mxu0  ;;  %v1601_v2 = vpop.f32.mrf.mxu1  ;;  %3541 = vmatpush3.msra.mxu0 %v1879_v58  ;;  %3591 = vmatprep.subr.mxu1 %v3827_v1 }
 0x54b   :  { %v1500_v3 = vadd.f32 %v4458_v30, %v1499_v0  ;;  %v1602_v4 = vadd.f32 %v4458_v30, %v1601_v2  ;;  %3470 = vmatmul.mubr.f32.gmra.mxu0 %v1516_v61  ;;  %3520 = vmatmul.mubr.f32.gmra.mxu1 %v1622_v62 }
 0x54c   :  { %v3368_v5 = vpop.f32.mrf.mxu0  ;;  %v3418_v6 = vpop.f32.mrf.mxu1  ;;  %3472 = vmatprep.mubr.msk.f32.mxu0 %vm3828_vm0, %v3827_v1  ;;  %3522 = vmatprep.mubr.msk.f32.mxu1 %vm3828_vm0, %v3827_v1 }
 0x54d   :  { %v1517_v7 = vmax.f32 %v1500_v3, 0.0  ;;  %v1623_v8 = vmax.f32 %v1602_v4, 0.0  ;;  %3542 = vmatprep.subr.mxu0 %v3827_v1  ;;  %3592 = vmatpush3.msra.mxu1 %v1880_v49  ;;  %v2117_v5 = vld [vmem:[#allocation5 + $0x60] sm:$0xff] }
 0x54e   :  { %v1504_v9 = vpop.f32.mrf.mxu0  ;;  %v1606_v11 = vpop.f32.mrf.mxu1  ;;  %3543 = vmatpush3.msra.mxu0 %v1878_v63  ;;  %3593 = vmatprep.subr.mxu1 %v3827_v1 }
 0x54f   :  { %v1505_v12 = vadd.f32 %v4458_v30, %v1504_v9  ;;  %v1607_v13 = vadd.f32 %v4458_v30, %v1606_v11  ;;  %3473 = vmatmul.mubr.f32.gmra.mxu0 %v1517_v7  ;;  %3523 = vmatmul.mubr.f32.gmra.mxu1 %v1623_v8 }
 0x550   :  { %v3371_v10 = vpop.f32.mrf.mxu0  ;;  %v3421_v15 = vpop.f32.mrf.mxu1  ;;  %3475 = vmatprep.mubr.msk.f32.mxu0 %vm3828_vm0, %v3827_v1  ;;  %3525 = vmatprep.mubr.msk.f32.mxu1 %vm3828_vm0, %v3827_v1 }
 0x551   :  { %v1518_v16 = vmax.f32 %v1505_v12, 0.0  ;;  %v1624_v17 = vmax.f32 %v1607_v13, 0.0  ;;  %3544 = vmatprep.subr.mxu0 %v3827_v1  ;;  %3594 = vmatpush3.msra.mxu1 %v1879_v58  ;;  %v2116_v10 = vld [vmem:[#allocation5 + $0x58] sm:$0xff] }
 0x552   :  { %v1509_v18 = vpop.f32.mrf.mxu0  ;;  %v1611_v19 = vpop.f32.mrf.mxu1  ;;  %3545 = vmatpush3.msra.mxu0 %v1877_v14  ;;  %3595 = vmatprep.subr.mxu1 %v3827_v1 }
 0x553   :  { %v1510_v21 = vadd.f32 %v4458_v30, %v1509_v18  ;;  %v1612_v22 = vadd.f32 %v4458_v30, %v1611_v19  ;;  %3476 = vmatmul.mubr.f32.gmra.mxu0 %v1518_v16  ;;  %3526 = vmatmul.mubr.f32.gmra.mxu1 %v1624_v17 }
 0x554   :  { %v3374_v24 = vpop.f32.mrf.mxu0  ;;  %v3424_v20 = vpop.f32.mrf.mxu1  ;;  %3478 = vmatprep.mubr.msk.f32.mxu0 %vm3828_vm0, %v3827_v1  ;;  %3528 = vmatprep.mubr.msk.f32.mxu1 %vm3828_vm0, %v3827_v1 }
 0x555   :  { %v1519_v25 = vmax.f32 %v1510_v21, 0.0  ;;  %v1625_v26 = vmax.f32 %v1612_v22, 0.0  ;;  %3546 = vmatprep.subr.mxu0 %v3827_v1  ;;  %3596 = vmatpush3.msra.mxu1 %v1878_v63  ;;  %v2115_v24 = vld [vmem:[#allocation5 + $0x50] sm:$0xff] }
 0x556   :  { %v1616_v27 = vpop.f32.mrf.mxu1  ;;  %3547 = vmatpush3.msra.mxu0 %v1876_v23  ;;  %3597 = vmatprep.subr.mxu1 %v3827_v1 }
 0x557   :  { %v1617_v29 = vadd.f32 %v4458_v30, %v1616_v27  ;;  %3479 = vmatmul.mubr.f32.gmra.mxu0 %v1519_v25  ;;  %3529 = vmatmul.mubr.f32.gmra.mxu1 %v1625_v26  ;;  %v1872_v30 = vld [vmem:[#allocation2 + $0x3a8] sm:$0xff] }
 0x558   :  { %v3427_v31 = vpop.f32.mrf.mxu1  ;;  %3531 = vmatprep.mubr.msk.f32.mxu1 %vm3828_vm0, %v3827_v1  ;;  %3548 = vmatprep.subr.mxu0 %v3827_v1 }
 0x559   :  { %v1626_v33 = vmax.f32 %v1617_v29, 0.0  ;;  %3549 = vmatpush3.msra.mxu0 %v1875_v28  ;;  %3598 = vmatpush3.msra.mxu1 %v1877_v14 }
 0x55a   :  { %3550 = vmatprep.subr.mxu0 %v3827_v1  ;;  %3599 = vmatprep.subr.mxu1 %v3827_v1 }
 0x55b   :  { %3532 = vmatmul.mubr.f32.gmra.mxu1 %v1626_v33  ;;  %3551 = vmatpush3.msra.mxu0 %v1874_v32  ;;  %v2114_v33 = vld [vmem:[#allocation5 + $0x48] sm:$0xff] }
 0x55c   :  { %3600 = vmatpush3.msra.mxu1 %v1876_v23  ;;  %3552 = vmatprep.subr.mxu0 %v3827_v1 }
 0x55d   :  { %3601 = vmatprep.subr.mxu1 %v3827_v1  ;;  %3553 = vmatpush3.msra.mxu0 %v1873_v35 }
 0x55e   :  { %3602 = vmatpush3.msra.mxu1 %v1875_v28  ;;  %3554 = vmatprep.subr.mxu0 %v3827_v1 }
 0x55f   :  { %3603 = vmatprep.subr.mxu1 %v3827_v1  ;;  %3555 = vmatpush3.msra.mxu0 %v1872_v30 }
 0x560   :  { %3604 = vmatpush3.msra.mxu1 %v1874_v32  ;;  %3556 = vmatprep.subr.mxu0 %v3827_v1 }
 0x561   :  { %3605 = vmatprep.subr.mxu1 %v3827_v1  ;;  %3557 = vmatpush3.msra.mxu0 %v1871_v36 }
 0x562   :  { %3606 = vmatpush3.msra.mxu1 %v1873_v35  ;;  %3558 = vmatprep.subr.mxu0 %v3827_v1 }
 0x563   :  { %3607 = vmatprep.subr.mxu1 %v3827_v1  ;;  %3559 = vmatpush3.msra.mxu0 %v1870_v34 }
 0x564   :  { %3608 = vmatpush3.msra.mxu1 %v1872_v30  ;;  %3560 = vmatprep.subr.mxu0 %v3827_v1 }
 0x565   :  { %3609 = vmatprep.subr.mxu1 %v3827_v1  ;;  %3566 = vmatprep.mubr.msk.f32.mxu0 %vm3828_vm0, %v3827_v1 }
 0x566   :  { %3610 = vmatpush3.msra.mxu1 %v1871_v36  ;;  %3619 = vmatprep.mubr.msk.f32.mxu1 %vm3828_vm0, %v3827_v1 }
 0x567   :  { %3611 = vmatprep.subr.mxu1 %v3827_v1  ;;  %3561 = vmatpush3.msra.mxu0 %v1869_v37 }
 0x568   :  { %3612 = vmatpush3.msra.mxu1 %v1870_v34  ;;  %3562 = vmatprep.subr.mxu0 %v3827_v1 }
 0x569   :  { %3613 = vmatprep.subr.mxu1 %v3827_v1  ;;  %3563 = vmatpush3.msra.mxu0 %v1868_v38 }
 0x56a   :  { %3614 = vmatpush3.msra.mxu1 %v1869_v37  ;;  %3564 = vmatprep.subr.mxu0 %v3827_v1 }
 0x56b   :  { %3615 = vmatprep.subr.mxu1 %v3827_v1  ;;  %3565 = vmatpush3.msra.mxu0 %v1867_v39 }
 0x56c   :  { %3616 = vmatpush3.msra.mxu1 %v1868_v38  ;;  %3640 = vmatprep.subr.mxu0 %v3827_v1  ;;  %v2113_v38 = vld [vmem:[#allocation5 + $0x40] sm:$0xff] }
 0x56d   :  { %3617 = vmatprep.subr.mxu1 %v3827_v1 }
 0x56e   :  { %3618 = vmatpush3.msra.mxu1 %v1867_v39 }
 0x56f   :  { %3693 = vmatprep.subr.mxu1 %v3827_v1 }
 0x5ff   :  { %v1718_v41 = vpop.f32.mrf.mxu0 }
 0x600   :  { %v1719_v42 = vadd.f32 %v4537_v40, %v1718_v41 }
 0x601   :  { %v3462_v44 = vpop.f32.mrf.mxu0 }
 0x602   :  { %v1752_v45 = vmax.f32 %v1719_v42, 0.0  ;;  %v2112_v42 = vld [vmem:[#allocation5 + $0x38] sm:$0xff] }
 0x603   :  { %v1723_v47 = vpop.f32.mrf.mxu0  ;;  %v1825_v43 = vpop.f32.mrf.mxu1 }
 0x604   :  { %v1724_v48 = vadd.f32 %v4537_v40, %v1723_v47  ;;  %v1826_v49 = vadd.f32 %v4537_v40, %v1825_v43  ;;  %3567 = vmatmul.mubr.f32.vlgmr.msra.gmra.mxu0 %v1752_v45  ;;  %v2111_v45 = vld [vmem:[#allocation5 + $0x30] sm:$0xff]  ;;  %v2108_v47 = vld [vmem:[#allocation5 + $0x18] sm:$0xff] }
 0x605   :  { %v3465_v51 = vpop.f32.mrf.mxu0  ;;  %v3515_v52 = vpop.f32.mrf.mxu1  ;;  %3569 = vmatprep.mubr.msk.f32.mxu0 %vm3828_vm0, %v3827_v1  ;;  %3641 = vmatpush3.msra.mxu0 %v2120_v46  ;;  %v2107_v43 = vld [vmem:[#allocation5 + $0x10] sm:$0xff] }
 0x606   :  { %v1753_v54 = vmax.f32 %v1724_v48, 0.0  ;;  %v1859_v55 = vmax.f32 %v1826_v49, 0.0  ;;  %3642 = vmatprep.subr.mxu0 %v3827_v1  ;;  %v2106_v48 = vld [vmem:[#allocation5 + $0x8] sm:$0xff]  ;;  %v2105_v49 = vld [vmem:[#allocation5] sm:$0xff] }
 0x607   :  { %v1728_v56 = vpop.f32.mrf.mxu0  ;;  %v1830_v57 = vpop.f32.mrf.mxu1  ;;  %3643 = vmatpush3.msra.mxu0 %v2119_v50 }
 0x608   :  { %v1729_v53 = vadd.f32 %v4537_v40, %v1728_v56  ;;  %v1831_v58 = vadd.f32 %v4537_v40, %v1830_v57  ;;  %3570 = vmatmul.mubr.f32.gmra.mxu0 %v1753_v54  ;;  %3620 = vmatmul.mubr.f32.vlgmr.msra.gmra.mxu1 %v1859_v55 }
 0x609   :  { %v3468_v60 = vpop.f32.mrf.mxu0  ;;  %v3518_v61 = vpop.f32.mrf.mxu1  ;;  %3572 = vmatprep.mubr.msk.f32.mxu0 %vm3828_vm0, %v3827_v1  ;;  %3622 = vmatprep.mubr.msk.f32.mxu1 %vm3828_vm0, %v3827_v1 }
 0x60a   :  { %v1754_v62 = vmax.f32 %v1729_v53, 0.0  ;;  %v1860_v0 = vmax.f32 %v1831_v58, 0.0  ;;  %3644 = vmatprep.subr.mxu0 %v3827_v1  ;;  %3694 = vmatpush3.msra.mxu1 %v2120_v46  ;;  %v2109_v46 = vld [vmem:[#allocation5 + $0x20] sm:$0xff] }
 0x60b   :  { %v1733_v2 = vpop.f32.mrf.mxu0  ;;  %v1835_v3 = vpop.f32.mrf.mxu1  ;;  %3645 = vmatpush3.msra.mxu0 %v2118_v59  ;;  %3695 = vmatprep.subr.mxu1 %v3827_v1 }
 0x60c   :  { %v1734_v4 = vadd.f32 %v4537_v40, %v1733_v2  ;;  %v1836_v63 = vadd.f32 %v4537_v40, %v1835_v3  ;;  %3573 = vmatmul.mubr.f32.gmra.mxu0 %v1754_v62  ;;  %3623 = vmatmul.mubr.f32.gmra.mxu1 %v1860_v0 }
 0x60d   :  { %v3471_v6 = vpop.f32.mrf.mxu0  ;;  %v3521_v7 = vpop.f32.mrf.mxu1  ;;  %3575 = vmatprep.mubr.msk.f32.mxu0 %vm3828_vm0, %v3827_v1  ;;  %3625 = vmatprep.mubr.msk.f32.mxu1 %vm3828_vm0, %v3827_v1 }
 0x60e   :  { %v1755_v8 = vmax.f32 %v1734_v4, 0.0  ;;  %v1861_v9 = vmax.f32 %v1836_v63, 0.0  ;;  %3646 = vmatprep.subr.mxu0 %v3827_v1  ;;  %3696 = vmatpush3.msra.mxu1 %v2119_v50  ;;  %v4614_v50 = vld [vmem:[%s4667_s4 + $0x7] ss:$0 sm:$0xff] }
 0x60f   :  { %v1738_v11 = vpop.f32.mrf.mxu0  ;;  %v1840_v12 = vpop.f32.mrf.mxu1  ;;  %3647 = vmatpush3.msra.mxu0 %v2117_v5  ;;  %3697 = vmatprep.subr.mxu1 %v3827_v1 }
 0x610   :  { %v1739_v13 = vadd.f32 %v4537_v40, %v1738_v11  ;;  %v1841_v14 = vadd.f32 %v4537_v40, %v1840_v12  ;;  %3576 = vmatmul.mubr.f32.gmra.mxu0 %v1755_v8  ;;  %3626 = vmatmul.mubr.f32.gmra.mxu1 %v1861_v9 }
 0x611   :  { %v3474_v15 = vpop.f32.mrf.mxu0  ;;  %v3524_v16 = vpop.f32.mrf.mxu1  ;;  %3578 = vmatprep.mubr.msk.f32.mxu0 %vm3828_vm0, %v3827_v1  ;;  %3628 = vmatprep.mubr.msk.f32.mxu1 %vm3828_vm0, %v3827_v1 }
 0x612   :  { %v1756_v17 = vmax.f32 %v1739_v13, 0.0  ;;  %v1862_v18 = vmax.f32 %v1841_v14, 0.0  ;;  %3648 = vmatprep.subr.mxu0 %v3827_v1  ;;  %3698 = vmatpush3.msra.mxu1 %v2118_v59 }
 0x613   :  { %v1743_v19 = vpop.f32.mrf.mxu0  ;;  %v1845_v21 = vpop.f32.mrf.mxu1  ;;  %3649 = vmatpush3.msra.mxu0 %v2116_v10  ;;  %3699 = vmatprep.subr.mxu1 %v3827_v1 }
 0x614   :  { %v1744_v22 = vadd.f32 %v4537_v40, %v1743_v19  ;;  %v1846_v23 = vadd.f32 %v4537_v40, %v1845_v21  ;;  %3579 = vmatmul.mubr.f32.gmra.mxu0 %v1756_v17  ;;  %3629 = vmatmul.mubr.f32.gmra.mxu1 %v1862_v18 }
 0x615   :  { %v3477_v20 = vpop.f32.mrf.mxu0  ;;  %v3527_v25 = vpop.f32.mrf.mxu1  ;;  %3581 = vmatprep.mubr.msk.f32.mxu0 %vm3828_vm0, %v3827_v1  ;;  %3631 = vmatprep.mubr.msk.f32.mxu1 %vm3828_vm0, %v3827_v1 }
 0x616   :  { %v1757_v26 = vmax.f32 %v1744_v22, 0.0  ;;  %v1863_v27 = vmax.f32 %v1846_v23, 0.0  ;;  %3650 = vmatprep.subr.mxu0 %v3827_v1  ;;  %3700 = vmatpush3.msra.mxu1 %v2117_v5 }
 0x617   :  { %v1748_v28 = vpop.f32.mrf.mxu0  ;;  %v1850_v29 = vpop.f32.mrf.mxu1  ;;  %3651 = vmatpush3.msra.mxu0 %v2115_v24  ;;  %3701 = vmatprep.subr.mxu1 %v3827_v1 }
 0x618   :  { %v1749_v31 = vadd.f32 %v4537_v40, %v1748_v28  ;;  %v1851_v32 = vadd.f32 %v4537_v40, %v1850_v29  ;;  %3582 = vmatmul.mubr.f32.gmra.mxu0 %v1757_v26  ;;  %3632 = vmatmul.mubr.f32.gmra.mxu1 %v1863_v27 }
 0x619   :  { %v3480_v35 = vpop.f32.mrf.mxu0  ;;  %v3530_v30 = vpop.f32.mrf.mxu1  ;;  %3584 = vmatprep.mubr.msk.f32.mxu0 %vm3828_vm0, %v3827_v1  ;;  %3634 = vmatprep.mubr.msk.f32.mxu1 %vm3828_vm0, %v3827_v1 }
 0x61a   :  { %v1758_v36 = vmax.f32 %v1749_v31, 0.0  ;;  %v1864_v34 = vmax.f32 %v1851_v32, 0.0  ;;  %3652 = vmatprep.subr.mxu0 %v3827_v1  ;;  %3702 = vmatpush3.msra.mxu1 %v2116_v10 }
 0x61b   :  { %v1855_v37 = vpop.f32.mrf.mxu1  ;;  %3653 = vmatpush3.msra.mxu0 %v2114_v33  ;;  %3703 = vmatprep.subr.mxu1 %v3827_v1 }
 0x61c   :  { %v1856_v39 = vadd.f32 %v4537_v40, %v1855_v37  ;;  %3585 = vmatmul.mubr.f32.gmra.mxu0 %v1758_v36  ;;  %3635 = vmatmul.mubr.f32.gmra.mxu1 %v1864_v34  ;;  %v2110_v40 = vld [vmem:[#allocation5 + $0x28] sm:$0xff] }
 0x61d   :  { %v3533_v41 = vpop.f32.mrf.mxu1  ;;  %3637 = vmatprep.mubr.msk.f32.mxu1 %vm3828_vm0, %v3827_v1  ;;  %3654 = vmatprep.subr.mxu0 %v3827_v1 }
 0x61e   :  { %v1865_v44 = vmax.f32 %v1856_v39, 0.0  ;;  %3655 = vmatpush3.msra.mxu0 %v2113_v38  ;;  %3704 = vmatpush3.msra.mxu1 %v2115_v24 }
 0x61f   :  { %3656 = vmatprep.subr.mxu0 %v3827_v1  ;;  %3705 = vmatprep.subr.mxu1 %v3827_v1 }
 0x620   :  { %3638 = vmatmul.mubr.f32.gmra.mxu1 %v1865_v44  ;;  %3657 = vmatpush3.msra.mxu0 %v2112_v42 }
 0x621   :  { %3706 = vmatpush3.msra.mxu1 %v2114_v33  ;;  %3658 = vmatprep.subr.mxu0 %v3827_v1 }
 0x622   :  { %3707 = vmatprep.subr.mxu1 %v3827_v1  ;;  %3659 = vmatpush3.msra.mxu0 %v2111_v45 }
 0x623   :  { %3708 = vmatpush3.msra.mxu1 %v2113_v38  ;;  %3660 = vmatprep.subr.mxu0 %v3827_v1 }
 0x624   :  { %3709 = vmatprep.subr.mxu1 %v3827_v1  ;;  %3661 = vmatpush3.msra.mxu0 %v2110_v40 }
 0x625   :  { %3710 = vmatpush3.msra.mxu1 %v2112_v42  ;;  %3662 = vmatprep.subr.mxu0 %v3827_v1 }
 0x626   :  { %3711 = vmatprep.subr.mxu1 %v3827_v1  ;;  %3663 = vmatpush3.msra.mxu0 %v2109_v46 }
 0x627   :  { %3712 = vmatpush3.msra.mxu1 %v2111_v45  ;;  %3664 = vmatprep.subr.mxu0 %v3827_v1 }
 0x628   :  { %3713 = vmatprep.subr.mxu1 %v3827_v1  ;;  %3665 = vmatpush3.msra.mxu0 %v2108_v47 }
 0x629   :  { %3714 = vmatpush3.msra.mxu1 %v2110_v40  ;;  %3666 = vmatprep.subr.mxu0 %v3827_v1  ;;  %v2377_v40 = vld [vmem:[%s4669_s6] ss:$0 sm:$0xff]  ;;  %s3829_s6 = smov [#allocation7]  }
 0x62a   :  { %3715 = vmatprep.subr.mxu1 %v3827_v1  ;;  %3672 = vmatprep.mubr.msk.f32.mxu0 %vm3828_vm0, %v3827_v1  ;;  %s2347_s3 = sshll.u32 %s3829_s6, 4  ;;  %s2348_s3 = int_to_ptr.vmem [resolvable:$true] %s2347_s3 }
 0x62b   :  { %3716 = vmatpush3.msra.mxu1 %v2109_v46  ;;  %3725 = vmatprep.mubr.msk.f32.mxu1 %vm3828_vm0, %v3827_v1  ;;  %s3796_s13 = scalar_lea.vmem %s2348_s3, 1792  ;;  %p3801_p11 = scmp.lt.s32.totalorder %s2348_s3, %s2348_s3 }
 0x62c   :  { %3717 = vmatprep.subr.mxu1 %v3827_v1  ;;  %3667 = vmatpush3.msra.mxu0 %v2107_v43  ;;  %p3797_p10 = scmp.ne.s32.totalorder %s2348_s3, %s3796_s13  ;;  %p3802_p12 = scmp.lt.s32.totalorder %s3796_s13, %s3796_s13 }
 0x62d   :  { %3718 = vmatpush3.msra.mxu1 %v2108_v47  ;;  %3668 = vmatprep.subr.mxu0 %v3827_v1 }
 0x62e   :  { %3719 = vmatprep.subr.mxu1 %v3827_v1  ;;  %3669 = vmatpush3.msra.mxu0 %v2106_v48  ;;  %p3803_p13 = por %p3802_p12, %p3801_p11 }
 0x62f   :  { %3720 = vmatpush3.msra.mxu1 %v2107_v43  ;;  %3670 = vmatprep.subr.mxu0 %v3827_v1 }
 0x630   :  { %3721 = vmatprep.subr.mxu1 %v3827_v1  ;;  %3671 = vmatpush3.msra.mxu0 %v2105_v49  ;;  %p3804_p0 = pnand %p3803_p13, %p3797_p10 }
 0x631   :  { %3722 = vmatpush3.msra.mxu1 %v2106_v48 }
 0x632   :  { %3723 = vmatprep.subr.mxu1 %v3827_v1 }
 0x633   :  { %3724 = vmatpush3.msra.mxu1 %v2105_v49 }
 0x6c4   :  { %v1957_v51 = vpop.f32.mrf.mxu0 }
 0x6c5   :  { %v1958_v52 = vadd.f32 %v4614_v50, %v1957_v51 }
 0x6c6   :  { %v3568_v54 = vpop.f32.mrf.mxu0 }
 0x6c7   :  { %v1991_v55 = vmax.f32 %v1958_v52, 0.0 }
 0x6c8   :  { %v1962_v56 = vpop.f32.mrf.mxu0  ;;  %v2064_v57 = vpop.f32.mrf.mxu1 }
 0x6c9   :  { %v1963_v53 = vadd.f32 %v4614_v50, %v1962_v56  ;;  %v2065_v58 = vadd.f32 %v4614_v50, %v2064_v57  ;;  %3673 = vmatmul.mubr.f32.vlgmr.msra.gmra.mxu0 %v1991_v55 }
 0x6ca   :  { %v3571_v59 = vpop.f32.mrf.mxu0  ;;  %v3621_v60 = vpop.f32.mrf.mxu1  ;;  %3675 = vmatprep.mubr.msk.f32.mxu0 %vm3828_vm0, %v3827_v1 }
 0x6cb   :  { %v1992_v61 = vmax.f32 %v1963_v53, 0.0  ;;  %v2098_v62 = vmax.f32 %v2065_v58, 0.0 }
 0x6cc   :  { %v1967_v0 = vpop.f32.mrf.mxu0  ;;  %v2069_v2 = vpop.f32.mrf.mxu1 }
 0x6cd   :  { %v1968_v3 = vadd.f32 %v4614_v50, %v1967_v0  ;;  %v2070_v4 = vadd.f32 %v4614_v50, %v2069_v2  ;;  %3676 = vmatmul.mubr.f32.gmra.mxu0 %v1992_v61  ;;  %3726 = vmatmul.mubr.f32.vlgmr.msra.gmra.mxu1 %v2098_v62 }
 0x6ce   :  { %v3574_v63 = vpop.f32.mrf.mxu0  ;;  %v3624_v5 = vpop.f32.mrf.mxu1  ;;  %3678 = vmatprep.mubr.msk.f32.mxu0 %vm3828_vm0, %v3827_v1  ;;  %3728 = vmatprep.mubr.msk.f32.mxu1 %vm3828_vm0, %v3827_v1 }
 0x6cf   :  { %v1993_v6 = vmax.f32 %v1968_v3, 0.0  ;;  %v2099_v7 = vmax.f32 %v2070_v4, 0.0 }
 0x6d0   :  { %v1972_v8 = vpop.f32.mrf.mxu0  ;;  %v2074_v9 = vpop.f32.mrf.mxu1 }
 0x6d1   :  { %v1973_v11 = vadd.f32 %v4614_v50, %v1972_v8  ;;  %v2075_v12 = vadd.f32 %v4614_v50, %v2074_v9  ;;  %3679 = vmatmul.mubr.f32.gmra.mxu0 %v1993_v6  ;;  %3729 = vmatmul.mubr.f32.gmra.mxu1 %v2099_v7 }
 0x6d2   :  { %v3577_v13 = vpop.f32.mrf.mxu0  ;;  %v3627_v14 = vpop.f32.mrf.mxu1  ;;  %3681 = vmatprep.mubr.msk.f32.mxu0 %vm3828_vm0, %v3827_v1  ;;  %3731 = vmatprep.mubr.msk.f32.mxu1 %vm3828_vm0, %v3827_v1 }
 0x6d3   :  { %v1994_v10 = vmax.f32 %v1973_v11, 0.0  ;;  %v2100_v15 = vmax.f32 %v2075_v12, 0.0 }
 0x6d4   :  { %v1977_v16 = vpop.f32.mrf.mxu0  ;;  %v2079_v17 = vpop.f32.mrf.mxu1 }
 0x6d5   :  { %v1978_v18 = vadd.f32 %v4614_v50, %v1977_v16  ;;  %v2080_v19 = vadd.f32 %v4614_v50, %v2079_v17  ;;  %3682 = vmatmul.mubr.f32.gmra.mxu0 %v1994_v10  ;;  %3732 = vmatmul.mubr.f32.gmra.mxu1 %v2100_v15 }
 0x6d6   :  { %v3580_v21 = vpop.f32.mrf.mxu0  ;;  %v3630_v22 = vpop.f32.mrf.mxu1  ;;  %3684 = vmatprep.mubr.msk.f32.mxu0 %vm3828_vm0, %v3827_v1  ;;  %3734 = vmatprep.mubr.msk.f32.mxu1 %vm3828_vm0, %v3827_v1 }
 0x6d7   :  { %v1995_v23 = vmax.f32 %v1978_v18, 0.0  ;;  %v2101_v24 = vmax.f32 %v2080_v19, 0.0 }
 0x6d8   :  { %v1982_v20 = vpop.f32.mrf.mxu0  ;;  %v2084_v25 = vpop.f32.mrf.mxu1 }
 0x6d9   :  { %v1983_v26 = vadd.f32 %v4614_v50, %v1982_v20  ;;  %v2085_v27 = vadd.f32 %v4614_v50, %v2084_v25  ;;  %3685 = vmatmul.mubr.f32.gmra.mxu0 %v1995_v23  ;;  %3735 = vmatmul.mubr.f32.gmra.mxu1 %v2101_v24 }
 0x6da   :  { %v3583_v28 = vpop.f32.mrf.mxu0  ;;  %v3633_v29 = vpop.f32.mrf.mxu1  ;;  %3687 = vmatprep.mubr.msk.f32.mxu0 %vm3828_vm0, %v3827_v1  ;;  %3737 = vmatprep.mubr.msk.f32.mxu1 %vm3828_vm0, %v3827_v1 }
 0x6db   :  { %v1996_v31 = vmax.f32 %v1983_v26, 0.0  ;;  %v2102_v32 = vmax.f32 %v2085_v27, 0.0 }
 0x6dc   :  { %v1987_v33 = vpop.f32.mrf.mxu0  ;;  %v2089_v35 = vpop.f32.mrf.mxu1 }
 0x6dd   :  { %v1988_v30 = vadd.f32 %v4614_v50, %v1987_v33  ;;  %v2090_v36 = vadd.f32 %v4614_v50, %v2089_v35  ;;  %3688 = vmatmul.mubr.f32.gmra.mxu0 %v1996_v31  ;;  %3738 = vmatmul.mubr.f32.gmra.mxu1 %v2102_v32 }
 0x6de   :  { %v3586_v34 = vpop.f32.mrf.mxu0  ;;  %v3636_v37 = vpop.f32.mrf.mxu1  ;;  %3690 = vmatprep.mubr.msk.f32.mxu0 %vm3828_vm0, %v3827_v1  ;;  %3740 = vmatprep.mubr.msk.f32.mxu1 %vm3828_vm0, %v3827_v1 }
 0x6df   :  { %v1997_v38 = vmax.f32 %v1988_v30, 0.0  ;;  %v2103_v39 = vmax.f32 %v2090_v36, 0.0 }
 0x6e0   :  { %v2094_v41 = vpop.f32.mrf.mxu1 }
 0x6e1   :  { %v2095_v42 = vadd.f32 %v4614_v50, %v2094_v41  ;;  %3691 = vmatmul.mubr.f32.gmra.mxu0 %v1997_v38  ;;  %3741 = vmatmul.mubr.f32.gmra.mxu1 %v2103_v39 }
 0x6e2   :  { %v3639_v44 = vpop.f32.mrf.mxu1  ;;  %3743 = vmatprep.mubr.msk.f32.mxu1 %vm3828_vm0, %v3827_v1 }
 0x6e3   :  { %v2104_v45 = vmax.f32 %v2095_v42, 0.0 }
 0x6e5   :  { %3744 = vmatmul.mubr.f32.gmra.mxu1 %v2104_v45 }
 0x789   :  { %v2194_v46 = vpop.f32.mrf.mxu0 }
 0x78a   :  { %v2195_v47 = vadd.f32 %v2377_v40, %v2194_v46 }
 0x78b   :  { %v3674_v43 = vpop.f32.mrf.mxu0 }
 0x78c   :  { %2228 = vst [vmem:[#allocation7] sm:$0xff] %v2195_v47 }
 0x78d   :  { %v2199_v48 = vpop.f32.mrf.mxu0  ;;  %v2301_v49 = vpop.f32.mrf.mxu1 }
 0x78e   :  { %v2200_v51 = vadd.f32 %v2377_v40, %v2199_v48  ;;  %v2302_v50 = vadd.f32 %v2377_v40, %v2301_v49 }
 0x78f   :  { %v3677_v52 = vpop.f32.mrf.mxu0  ;;  %v3727_v54 = vpop.f32.mrf.mxu1 }
 0x790   :  { %2229 = vst [vmem:[#allocation7 + $0x8] sm:$0xff] %v2200_v51  ;;  %2335 = vst [vmem:[#allocation7 + $0x38] sm:$0xff] %v2302_v50 }
 0x791   :  { %v2204_v55 = vpop.f32.mrf.mxu0  ;;  %v2306_v1 = vpop.f32.mrf.mxu1 }
 0x792   :  { %v2205_v56 = vadd.f32 %v2377_v40, %v2204_v55  ;;  %v2307_v57 = vadd.f32 %v2377_v40, %v2306_v1 }
 0x793   :  { %v3680_v53 = vpop.f32.mrf.mxu0  ;;  %v3730_v58 = vpop.f32.mrf.mxu1 }
 0x794   :  { %2230 = vst [vmem:[#allocation7 + $0x10] sm:$0xff] %v2205_v56  ;;  %2336 = vst [vmem:[#allocation7 + $0x40] sm:$0xff] %v2307_v57 }
 0x795   :  { %v2209_v59 = vpop.f32.mrf.mxu0  ;;  %v2311_v60 = vpop.f32.mrf.mxu1 }
 0x796   :  { %v2210_v61 = vadd.f32 %v2377_v40, %v2209_v59  ;;  %v2312_v62 = vadd.f32 %v2377_v40, %v2311_v60 }
 0x797   :  { %v3683_v0 = vpop.f32.mrf.mxu0  ;;  %v3733_v2 = vpop.f32.mrf.mxu1 }
 0x798   :  { %2231 = vst [vmem:[#allocation7 + $0x18] sm:$0xff] %v2210_v61  ;;  %2337 = vst [vmem:[#allocation7 + $0x48] sm:$0xff] %v2312_v62 }
 0x799   :  { %v2214_v3 = vpop.f32.mrf.mxu0  ;;  %v2316_v4 = vpop.f32.mrf.mxu1 }
 0x79a   :  { %v2215_v63 = vadd.f32 %v2377_v40, %v2214_v3  ;;  %v2317_v5 = vadd.f32 %v2377_v40, %v2316_v4 }
 0x79b   :  { %v3686_v6 = vpop.f32.mrf.mxu0  ;;  %v3736_v7 = vpop.f32.mrf.mxu1 }
 0x79c   :  { %2232 = vst [vmem:[#allocation7 + $0x20] sm:$0xff] %v2215_v63  ;;  %2338 = vst [vmem:[#allocation7 + $0x50] sm:$0xff] %v2317_v5 }
 0x79d   :  { %v2219_v8 = vpop.f32.mrf.mxu0  ;;  %v2321_v9 = vpop.f32.mrf.mxu1 }
 0x79e   :  { %v2220_v11 = vadd.f32 %v2377_v40, %v2219_v8  ;;  %v2322_v12 = vadd.f32 %v2377_v40, %v2321_v9 }
 0x79f   :  { %v3689_v13 = vpop.f32.mrf.mxu0  ;;  %v3739_v14 = vpop.f32.mrf.mxu1 }
 0x7a0   :  { %2233 = vst [vmem:[#allocation7 + $0x28] sm:$0xff] %v2220_v11  ;;  %2339 = vst [vmem:[#allocation7 + $0x58] sm:$0xff] %v2322_v12 }
 0x7a1   :  { %v2224_v10 = vpop.f32.mrf.mxu0  ;;  %v2326_v15 = vpop.f32.mrf.mxu1 }
 0x7a2   :  { %v2225_v16 = vadd.f32 %v2377_v40, %v2224_v10  ;;  %v2327_v17 = vadd.f32 %v2377_v40, %v2326_v15 }
 0x7a3   :  { %v3692_v18 = vpop.f32.mrf.mxu0  ;;  %v3742_v19 = vpop.f32.mrf.mxu1 }
 0x7a4   :  { %2234 = vst [vmem:[#allocation7 + $0x30] sm:$0xff] %v2225_v16  ;;  %2340 = vst [vmem:[#allocation7 + $0x60] sm:$0xff] %v2327_v17 }
 0x7a5   :  { %v2331_v21 = vpop.f32.mrf.mxu1 }
 0x7a6   :  { %v2332_v22 = vadd.f32 %v2377_v40, %v2331_v21 }
 0x7a7   :  { %v3745_v23 = vpop.f32.mrf.mxu1 }
 0x7a8   :  { %2341 = vst [vmem:[#allocation7 + $0x68] sm:$0xff] %v2332_v22 }
 0x7a9   :  { %3807 = shalt.err (!%p3804_p0)
}
 0x7aa   :  { %2353 = dma.vmem_to_hbm [thread:$0]  %s2348_s3, 1792, %s4670_s7, [#allocation4], %s3823_s27, %s3823_s27, %s3824_s28  }
 0x7ab   :  { %3820 = dma.done.wait [#allocation4], 1792  }
 0x7ac   :  { %3821 = vsyncadd [#allocation4], 4294965504 }
 0x7ad   :  { %2357 = vsyncpa [#allocation3], 1 }
 0x7ae   :  { %2358 = vsyncpa [#allocation6], 1 }
 0x7af   :  { %2359 = vsyncpa [#allocation4], 1 }

</bundles_post_ra>
